<compile_context>
chip_gen: v6e
topology: v6e:2x2x1
jax: 0.10.0
libtpu: 0.0.40
codegen_flags: <defaults>
</compile_context>

<pallas_src>
import functools

import jax
import jax.numpy as jnp
from jax import lax
from jax.experimental import pallas as pl
from jax.experimental.pallas import tpu as pltpu


def _silu(y):
    return y * jax.nn.sigmoid(y)


def _make_gsconv_kernel(*, k, cin, c_half, c2, H, W, mxu_dtype, even_shuffle):
    L = H * W
    p1 = k // 2

    def kernel(x_ref, w1_ref, s1_ref, b1_ref, w2_ref, s2_ref, b2_ref,
               cm1_ref, cm2_ref, o_ref):
        # x_ref : (1, cin, H*W)        flat NCHW input for one batch element
        # w1_ref: (c_, k*k*cin)        cv1 weights, tap-major rows (mxu dtype)
        # s1/b1 : (c_, 1)              folded BN1 scale / bias (f32)
        # w2_ref: (c_, 25)             cv2 depthwise taps, t = kh*5 + kw
        # s2/b2 : (c_, 1)              folded BN2 scale / bias (f32)
        # cm1   : (k, H*W)             cv1 column-validity masks (per kw)
        # cm2   : (5, H*W)             cv2 column-validity masks (per kw)
        # o_ref : (1, c2, H*W)         lane-dense output block
        f32 = jnp.float32

        # ---------------- cv1: k x k conv as ONE MXU contraction ----------------
        if k == 1:
            patches = x_ref[0]                                     # (cin, L)
        else:
            # Vertical padding = zero lanes concatenated in VMEM; horizontal
            # padding = column masks (row width stays W -> no junk columns).
            zpad = jnp.zeros((cin, p1 * (W + 1)), f32)
            xp = jnp.concatenate([zpad, x_ref[0], zpad], axis=1)
            cm1 = cm1_ref[...]                                     # (k, L)
            rows = []
            for kh in range(k):
                for kw in range(k):
                    off = kh * W + kw
                    sl = xp[:, off:off + L]                        # (cin, L)
                    if kw != p1:
                        sl = sl * cm1[kw:kw + 1, :]
                    rows.append(sl)
            patches = jnp.concatenate(rows, axis=0)                # (k*k*cin, L)

        acc1 = jnp.dot(w1_ref[...], patches.astype(mxu_dtype),
                       preferred_element_type=f32)                 # (c_, L) f32
        x1 = _silu(acc1 * s1_ref[...] + b1_ref[...])               # (c_, L)

        # ---------------- cv2: 5x5 depthwise conv (VPU tap loop) ----------------
        zpad2 = jnp.zeros((c_half, 2 * W + 2), f32)
        x1rp = jnp.concatenate([zpad2, x1, zpad2], axis=1)         # (c_, L + 4W + 4)
        cm2 = cm2_ref[...]                                         # (5, L)
        w2m = w2_ref[...]                                          # (c_, 25)

        acc2 = jnp.zeros((c_half, L), f32)
        for kh in range(5):
            for kw in range(5):
                t = kh * 5 + kw
                off = kh * W + kw
                sl = x1rp[:, off:off + L]                          # lane-shifted window
                contrib = w2m[:, t:t + 1] * sl                     # per-channel scalar
                if kw != 2:
                    contrib = contrib * cm2[kw:kw + 1, :]
                acc2 = acc2 + contrib
        d = _silu(acc2 * s2_ref[...] + b2_ref[...])                # (c_, L)

        # ---------------- channel shuffle + concat ----------------
        if even_shuffle:
            # cv1/cv2 params were pre-permuted (evens-then-odds) in the wrapper,
            # so the shuffled output is just 4 contiguous channel blocks.
            h = c_half // 2
            out = jnp.concatenate([x1[:h], d[:h], x1[h:], d[h:]], axis=0)
        else:
            # Generic (odd c_) fallback: static per-channel assembly.
            chan_rows = []
            for c in range(c2):
                src = 2 * c if c < c_half else 2 * (c - c_half) + 1
                if src < c_half:
                    chan_rows.append(x1[src:src + 1, :])
                else:
                    chan_rows.append(d[src - c_half:src - c_half + 1, :])
            out = jnp.concatenate(chan_rows, axis=0)

        o_ref[0] = out.astype(o_ref.dtype)                         # lane-dense store

    return kernel


def _fold_bn(gamma, beta, mean, var, eps):
    scale = gamma * lax.rsqrt(var + eps)
    bias = beta - mean * scale
    return scale.astype(jnp.float32), bias.astype(jnp.float32)


@functools.partial(jax.jit, static_argnames=("k", "s", "eps", "mxu_dtype"))
def gsconv(x, w1, g1, b1, rm1, rv1, w2, g2, b2, rm2, rv2,
           *, k=1, s=1, eps=1e-5, mxu_dtype=jnp.bfloat16):
    """Fused GSConv forward (eval-mode BN, SiLU). NCHW in -> NCHW out."""
    N, cin, H, W = x.shape
    c_half = w1.shape[0]
    c2 = 2 * c_half
    assert w1.shape == (c_half, cin, k, k)
    assert w2.shape == (c_half, 1, 5, 5)
    assert k % 2 == 1, "only odd kernel sizes (autopad) supported"
    assert s == 1  # TODO(synk): stride > 1 not implemented
    p1 = k // 2
    L = H * W

    scale1, bias1 = _fold_bn(g1, b1, rm1, rv1, eps)
    scale2, bias2 = _fold_bn(g2, b2, rm2, rv2, eps)

    even_shuffle = (c_half % 2 == 0)
    if even_shuffle:
        # Fold the channel shuffle into a static permutation of the parameters.
        sigma = jnp.array(list(range(0, c_half, 2)) + list(range(1, c_half, 2)),
                          dtype=jnp.int32)
        w1 = w1[sigma]
        scale1, bias1 = scale1[sigma], bias1[sigma]
        w2 = w2[sigma]
        scale2, bias2 = scale2[sigma], bias2[sigma]

    # cv1 weights as a single (c_, k*k*cin) contraction matrix (tap-major rows,
    # matching the in-kernel im2col order); cast to the MXU input dtype.
    w1_mat = jnp.transpose(w1, (0, 2, 3, 1)).reshape(c_half, k * k * cin)
    w1_mat = w1_mat.astype(mxu_dtype)
    # cv2 depthwise taps: (c_, 25), column t = kh*5 + kw.
    w2_taps = w2[:, 0].reshape(c_half, 25).astype(jnp.float32)

    scale1, bias1 = scale1[:, None], bias1[:, None]
    scale2, bias2 = scale2[:, None], bias2[:, None]

    # Column-validity masks: horizontal zero-padding is emulated by masking the
    # wrapped lanes of the flat row-major layout (no padded HBM copy of the image).
    col = jnp.arange(L, dtype=jnp.int32) % W

    def col_masks(kk, pad):
        rows = []
        for kw in range(kk):
            dlt = kw - pad
            rows.append(((col + dlt >= 0) & (col + dlt < W)).astype(jnp.float32))
        return jnp.stack(rows, axis=0)                             # (kk, L)

    cmask1 = col_masks(k, p1)
    cmask2 = col_masks(5, 2)

    x_flat = x.reshape(N, cin, L).astype(jnp.float32)              # free reshape

    kernel = _make_gsconv_kernel(k=k, cin=cin, c_half=c_half, c2=c2, H=H, W=W,
                                 mxu_dtype=mxu_dtype, even_shuffle=even_shuffle)

    out_flat = pl.pallas_call(
        kernel,
        out_shape=jax.ShapeDtypeStruct((N, c2, L), x.dtype),
        grid=(N,),
        in_specs=[
            pl.BlockSpec((1, cin, L), lambda n: (n, 0, 0)),
            pl.BlockSpec((c_half, k * k * cin), lambda n: (0, 0)),
            pl.BlockSpec((c_half, 1), lambda n: (0, 0)),
            pl.BlockSpec((c_half, 1), lambda n: (0, 0)),
            pl.BlockSpec((c_half, 25), lambda n: (0, 0)),
            pl.BlockSpec((c_half, 1), lambda n: (0, 0)),
            pl.BlockSpec((c_half, 1), lambda n: (0, 0)),
            pl.BlockSpec((k, L), lambda n: (0, 0)),
            pl.BlockSpec((5, L), lambda n: (0, 0)),
        ],
        out_specs=pl.BlockSpec((1, c2, L), lambda n: (n, 0, 0)),
        compiler_params=pltpu.CompilerParams(
            dimension_semantics=("parallel",)),
    )(x_flat, w1_mat, scale1, bias1, w2_taps, scale2, bias2, cmask1, cmask2)

    # (N, c2, H*W) is already NCHW-contiguous: this reshape is free (no transpose).
    return out_flat.reshape(N, c2, H, W)


def _gsconv_reference(x, w1, g1, b1, rm1, rv1, w2, g2, b2, rm2, rv2,
                      *, k=1, s=1, eps=1e-5):
    """Pure-JAX mirror of the PyTorch GSConv.forward (eval-mode BN, SiLU)."""
    p1 = k // 2
    c_half = w1.shape[0]

    def bn(y, g, b, m, v):
        inv = 1.0 / jnp.sqrt(v + eps)
        return ((y - m[None, :, None, None]) * inv[None, :, None, None]
                * g[None, :, None, None] + b[None, :, None, None])

    x1 = lax.conv_general_dilated(
        x, w1, (s, s), ((p1, p1), (p1, p1)),
        dimension_numbers=("NCHW", "OIHW", "NCHW"),
        precision=lax.Precision.HIGHEST)
    x1 = _silu(bn(x1, g1, b1, rm1, rv1))

    d = lax.conv_general_dilated(
        x1, w2, (1, 1), ((2, 2), (2, 2)),
        dimension_numbers=("NCHW", "OIHW", "NCHW"),
        feature_group_count=c_half,
        precision=lax.Precision.HIGHEST)
    d = _silu(bn(d, g2, b2, rm2, rv2))

    x2 = jnp.concatenate([x1, d], axis=1)
    b_, n, h, w = x2.shape
    y = x2.reshape(b_ * n // 2, 2, h * w)
    y = jnp.transpose(y, (1, 0, 2))
    y = y.reshape(2, -1, n // 2, h, w)
    return jnp.concatenate([y[0], y[1]], axis=1)


if __name__ == "__main__":
    # GSConv(c1=4, c2=8) on a (2, 4, 16, 16) input (module defaults: k=1, s=1).
    N, c1, H, W = 2, 4, 16, 16
    c2 = 8
    c_half = c2 // 2

    key = jax.random.PRNGKey(0)
    ks = jax.random.split(key, 12)

    x = jax.random.normal(ks[0], (N, c1, H, W), dtype=jnp.float32)

    def conv_bn_params(cout, cin, kk, keys):
        w = 0.3 * jax.random.normal(keys[0], (cout, cin, kk, kk), jnp.float32)
        g = 1.0 + 0.1 * jax.random.normal(keys[1], (cout,), jnp.float32)
        b = 0.1 * jax.random.normal(keys[2], (cout,), jnp.float32)
        m = 0.1 * jax.random.normal(keys[3], (cout,), jnp.float32)
        v = jax.random.uniform(keys[4], (cout,), jnp.float32,
                               minval=0.5, maxval=1.5)
        return w, g, b, m, v

    w1, g1, b1, rm1, rv1 = conv_bn_params(c_half, c1, 1, ks[1:6])
    w2, g2, b2, rm2, rv2 = conv_bn_params(c_half, 1, 5, ks[6:11])
    w1k3 = 0.3 * jax.random.normal(ks[11], (c_half, c1, 3, 3), jnp.float32)

    def check(out, ref, atol, rtol, tag):
        assert out.shape == ref.shape, tag
        assert bool(jnp.all(jnp.isfinite(out))), tag
        assert jnp.allclose(out, ref, atol=atol, rtol=rtol), (
            tag, float(jnp.max(jnp.abs(out - ref))))

    # 1) module defaults (k=1, s=1), f32 MXU path -> tight tolerance.
    out = gsconv(x, w1, g1, b1, rm1, rv1, w2, g2, b2, rm2, rv2,
                 k=1, s=1, mxu_dtype=jnp.float32)
    out = jax.block_until_ready(out)
    ref = _gsconv_reference(x, w1, g1, b1, rm1, rv1, w2, g2, b2, rm2, rv2, k=1)
    check(out, ref, 2e-3, 2e-3, "k=1 f32")

    # 2) k=3 cv1 (exercises the in-kernel im2col / single-contraction path).
    out3 = gsconv(x, w1k3, g1, b1, rm1, rv1, w2, g2, b2, rm2, rv2,
                  k=3, s=1, mxu_dtype=jnp.float32)
    out3 = jax.block_until_ready(out3)
    ref3 = _gsconv_reference(x, w1k3, g1, b1, rm1, rv1, w2, g2, b2, rm2, rv2, k=3)
    check(out3, ref3, 2e-3, 2e-3, "k=3 f32")

    # 3) default fast path: bf16 MXU inputs with f32 accumulation.
    outb = gsconv(x, w1, g1, b1, rm1, rv1, w2, g2, b2, rm2, rv2,
                  k=1, s=1, mxu_dtype=jnp.bfloat16)
    outb = jax.block_until_ready(outb)
    check(outb, ref, 1e-1, 1e-1, "k=1 bf16")

    print("KERNEL_OK")
</pallas_src>

<mosaic_0001>
module attributes {stable_mosaic.version = 11 : i64} {
  func.func @kernel(%arg0: i32, %arg1: memref<1x4x256xf32, #tpu.memory_space<vmem>>, %arg2: memref<4x4xf32, #tpu.memory_space<vmem>>, %arg3: memref<4x1xf32, #tpu.memory_space<vmem>>, %arg4: memref<4x1xf32, #tpu.memory_space<vmem>>, %arg5: memref<4x25xf32, #tpu.memory_space<vmem>>, %arg6: memref<4x1xf32, #tpu.memory_space<vmem>>, %arg7: memref<4x1xf32, #tpu.memory_space<vmem>>, %arg8: memref<1x256xf32, #tpu.memory_space<vmem>>, %arg9: memref<5x256xf32, #tpu.memory_space<vmem>>, %arg10: memref<1x8x256xf32, #tpu.memory_space<vmem>>) attributes {dimension_semantics = [#tpu.dimension_semantics<parallel>], iteration_bounds = array<i64: 2>, scalar_prefetch = 0 : i64, scratch_operands = 0 : i64, tpu.core_type = #tpu.core_type<tc>, window_params = [{transform_indices = @transform_0, window_bounds = array<i64: 1, 4, 256>}, {pipeline_mode = #tpu.pipeline_mode<synchronous>, transform_indices = @transform_1, window_bounds = array<i64: 4, 4>}, {pipeline_mode = #tpu.pipeline_mode<synchronous>, transform_indices = @transform_2, window_bounds = array<i64: 4, 1>}, {pipeline_mode = #tpu.pipeline_mode<synchronous>, transform_indices = @transform_3, window_bounds = array<i64: 4, 1>}, {pipeline_mode = #tpu.pipeline_mode<synchronous>, transform_indices = @transform_4, window_bounds = array<i64: 4, 25>}, {pipeline_mode = #tpu.pipeline_mode<synchronous>, transform_indices = @transform_5, window_bounds = array<i64: 4, 1>}, {pipeline_mode = #tpu.pipeline_mode<synchronous>, transform_indices = @transform_6, window_bounds = array<i64: 4, 1>}, {pipeline_mode = #tpu.pipeline_mode<synchronous>, transform_indices = @transform_7, window_bounds = array<i64: 1, 256>}, {pipeline_mode = #tpu.pipeline_mode<synchronous>, transform_indices = @transform_8, window_bounds = array<i64: 5, 256>}, {transform_indices = @transform_9, window_bounds = array<i64: 1, 8, 256>}]} {
    %c0 = arith.constant 0 : index
    %c0_0 = arith.constant 0 : index
    %c0_1 = arith.constant 0 : index
    %0 = vector.load %arg1[%c0, %c0_0, %c0_1] : memref<1x4x256xf32, #tpu.memory_space<vmem>>, vector<1x4x256xf32>
    %1 = vector.shape_cast %0 : vector<1x4x256xf32> to vector<4x256xf32>
    %c0_2 = arith.constant 0 : index
    %c0_3 = arith.constant 0 : index
    %2 = vector.load %arg2[%c0_2, %c0_3] : memref<4x4xf32, #tpu.memory_space<vmem>>, vector<4x4xf32>
    %cst = arith.constant dense<0.000000e+00> : vector<4x256xf32>
    %3 = tpu.matmul %2, %1, %cst {dimension_numbers = #tpu.dot_dimension_numbers<[1], [0], [0], [1], [0, 0, 1, 1], [], []>} : vector<4x4xf32>, vector<4x256xf32>, vector<4x256xf32> -> vector<4x256xf32>
    %c0_4 = arith.constant 0 : index
    %c0_5 = arith.constant 0 : index
    %4 = vector.load %arg3[%c0_4, %c0_5] : memref<4x1xf32, #tpu.memory_space<vmem>>, vector<4x1xf32>
    %5 = vector.broadcast %4 : vector<4x1xf32> to vector<4x256xf32>
    %6 = arith.mulf %3, %5 : vector<4x256xf32>
    %c0_6 = arith.constant 0 : index
    %c0_7 = arith.constant 0 : index
    %7 = vector.load %arg4[%c0_6, %c0_7] : memref<4x1xf32, #tpu.memory_space<vmem>>, vector<4x1xf32>
    %8 = vector.broadcast %7 : vector<4x1xf32> to vector<4x256xf32>
    %9 = arith.addf %6, %8 : vector<4x256xf32>
    %10 = arith.negf %9 : vector<4x256xf32>
    %11 = math.exp %10 : vector<4x256xf32>
    %cst_8 = arith.constant 1.000000e+00 : f32
    %12 = vector.broadcast %cst_8 : f32 to vector<4x256xf32>
    %13 = arith.addf %12, %11 : vector<4x256xf32>
    %14 = arith.divf %12, %13 : vector<4x256xf32>
    %15 = arith.mulf %9, %14 : vector<4x256xf32>
    %cst_9 = arith.constant 0.000000e+00 : f32
    %16 = vector.broadcast %cst_9 : f32 to vector<4x34xf32>
    %17 = tpu.concatenate %16, %15, %16 in 1 : vector<4x34xf32>, vector<4x256xf32>, vector<4x34xf32> -> vector<4x324xf32>
    %c0_10 = arith.constant 0 : index
    %c0_11 = arith.constant 0 : index
    %18 = vector.load %arg9[%c0_10, %c0_11] : memref<5x256xf32, #tpu.memory_space<vmem>>, vector<5x256xf32>
    %c0_12 = arith.constant 0 : index
    %c0_13 = arith.constant 0 : index
    %19 = vector.load %arg5[%c0_12, %c0_13] : memref<4x25xf32, #tpu.memory_space<vmem>>, vector<4x25xf32>
    %cst_14 = arith.constant 0.000000e+00 : f32
    %20 = vector.broadcast %cst_14 : f32 to vector<4x256xf32>
    %21 = vector.extract_strided_slice %17 {offsets = [0, 0], sizes = [4, 256], strides = [1, 1]} : vector<4x324xf32> to vector<4x256xf32>
    %22 = vector.extract_strided_slice %19 {offsets = [0, 0], sizes = [4, 1], strides = [1, 1]} : vector<4x25xf32> to vector<4x1xf32>
    %23 = vector.broadcast %22 : vector<4x1xf32> to vector<4x256xf32>
    %24 = arith.mulf %23, %21 : vector<4x256xf32>
    %25 = vector.extract_strided_slice %18 {offsets = [0, 0], sizes = [1, 256], strides = [1, 1]} : vector<5x256xf32> to vector<1x256xf32>
    %26 = vector.broadcast %25 : vector<1x256xf32> to vector<4x256xf32>
    %27 = arith.mulf %24, %26 : vector<4x256xf32>
    %28 = arith.addf %20, %27 : vector<4x256xf32>
    %29 = vector.extract_strided_slice %17 {offsets = [0, 1], sizes = [4, 256], strides = [1, 1]} : vector<4x324xf32> to vector<4x256xf32>
    %30 = vector.extract_strided_slice %19 {offsets = [0, 1], sizes = [4, 1], strides = [1, 1]} : vector<4x25xf32> to vector<4x1xf32>
    %31 = vector.broadcast %30 : vector<4x1xf32> to vector<4x256xf32>
    %32 = arith.mulf %31, %29 : vector<4x256xf32>
    %33 = vector.extract_strided_slice %18 {offsets = [1, 0], sizes = [1, 256], strides = [1, 1]} : vector<5x256xf32> to vector<1x256xf32>
    %34 = vector.broadcast %33 : vector<1x256xf32> to vector<4x256xf32>
    %35 = arith.mulf %32, %34 : vector<4x256xf32>
    %36 = arith.addf %28, %35 : vector<4x256xf32>
    %37 = vector.extract_strided_slice %17 {offsets = [0, 2], sizes = [4, 256], strides = [1, 1]} : vector<4x324xf32> to vector<4x256xf32>
    %38 = vector.extract_strided_slice %19 {offsets = [0, 2], sizes = [4, 1], strides = [1, 1]} : vector<4x25xf32> to vector<4x1xf32>
    %39 = vector.broadcast %38 : vector<4x1xf32> to vector<4x256xf32>
    %40 = arith.mulf %39, %37 : vector<4x256xf32>
    %41 = arith.addf %36, %40 : vector<4x256xf32>
    %42 = vector.extract_strided_slice %17 {offsets = [0, 3], sizes = [4, 256], strides = [1, 1]} : vector<4x324xf32> to vector<4x256xf32>
    %43 = vector.extract_strided_slice %19 {offsets = [0, 3], sizes = [4, 1], strides = [1, 1]} : vector<4x25xf32> to vector<4x1xf32>
    %44 = vector.broadcast %43 : vector<4x1xf32> to vector<4x256xf32>
    %45 = arith.mulf %44, %42 : vector<4x256xf32>
    %46 = vector.extract_strided_slice %18 {offsets = [3, 0], sizes = [1, 256], strides = [1, 1]} : vector<5x256xf32> to vector<1x256xf32>
    %47 = vector.broadcast %46 : vector<1x256xf32> to vector<4x256xf32>
    %48 = arith.mulf %45, %47 : vector<4x256xf32>
    %49 = arith.addf %41, %48 : vector<4x256xf32>
    %50 = vector.extract_strided_slice %17 {offsets = [0, 4], sizes = [4, 256], strides = [1, 1]} : vector<4x324xf32> to vector<4x256xf32>
    %51 = vector.extract_strided_slice %19 {offsets = [0, 4], sizes = [4, 1], strides = [1, 1]} : vector<4x25xf32> to vector<4x1xf32>
    %52 = vector.broadcast %51 : vector<4x1xf32> to vector<4x256xf32>
    %53 = arith.mulf %52, %50 : vector<4x256xf32>
    %54 = vector.extract_strided_slice %18 {offsets = [4, 0], sizes = [1, 256], strides = [1, 1]} : vector<5x256xf32> to vector<1x256xf32>
    %55 = vector.broadcast %54 : vector<1x256xf32> to vector<4x256xf32>
    %56 = arith.mulf %53, %55 : vector<4x256xf32>
    %57 = arith.addf %49, %56 : vector<4x256xf32>
    %58 = vector.extract_strided_slice %17 {offsets = [0, 16], sizes = [4, 256], strides = [1, 1]} : vector<4x324xf32> to vector<4x256xf32>
    %59 = vector.extract_strided_slice %19 {offsets = [0, 5], sizes = [4, 1], strides = [1, 1]} : vector<4x25xf32> to vector<4x1xf32>
    %60 = vector.broadcast %59 : vector<4x1xf32> to vector<4x256xf32>
    %61 = arith.mulf %60, %58 : vector<4x256xf32>
    %62 = vector.extract_strided_slice %18 {offsets = [0, 0], sizes = [1, 256], strides = [1, 1]} : vector<5x256xf32> to vector<1x256xf32>
    %63 = vector.broadcast %62 : vector<1x256xf32> to vector<4x256xf32>
    %64 = arith.mulf %61, %63 : vector<4x256xf32>
    %65 = arith.addf %57, %64 : vector<4x256xf32>
    %66 = vector.extract_strided_slice %17 {offsets = [0, 17], sizes = [4, 256], strides = [1, 1]} : vector<4x324xf32> to vector<4x256xf32>
    %67 = vector.extract_strided_slice %19 {offsets = [0, 6], sizes = [4, 1], strides = [1, 1]} : vector<4x25xf32> to vector<4x1xf32>
    %68 = vector.broadcast %67 : vector<4x1xf32> to vector<4x256xf32>
    %69 = arith.mulf %68, %66 : vector<4x256xf32>
    %70 = vector.extract_strided_slice %18 {offsets = [1, 0], sizes = [1, 256], strides = [1, 1]} : vector<5x256xf32> to vector<1x256xf32>
    %71 = vector.broadcast %70 : vector<1x256xf32> to vector<4x256xf32>
    %72 = arith.mulf %69, %71 : vector<4x256xf32>
    %73 = arith.addf %65, %72 : vector<4x256xf32>
    %74 = vector.extract_strided_slice %17 {offsets = [0, 18], sizes = [4, 256], strides = [1, 1]} : vector<4x324xf32> to vector<4x256xf32>
    %75 = vector.extract_strided_slice %19 {offsets = [0, 7], sizes = [4, 1], strides = [1, 1]} : vector<4x25xf32> to vector<4x1xf32>
    %76 = vector.broadcast %75 : vector<4x1xf32> to vector<4x256xf32>
    %77 = arith.mulf %76, %74 : vector<4x256xf32>
    %78 = arith.addf %73, %77 : vector<4x256xf32>
    %79 = vector.extract_strided_slice %17 {offsets = [0, 19], sizes = [4, 256], strides = [1, 1]} : vector<4x324xf32> to vector<4x256xf32>
    %80 = vector.extract_strided_slice %19 {offsets = [0, 8], sizes = [4, 1], strides = [1, 1]} : vector<4x25xf32> to vector<4x1xf32>
    %81 = vector.broadcast %80 : vector<4x1xf32> to vector<4x256xf32>
    %82 = arith.mulf %81, %79 : vector<4x256xf32>
    %83 = vector.extract_strided_slice %18 {offsets = [3, 0], sizes = [1, 256], strides = [1, 1]} : vector<5x256xf32> to vector<1x256xf32>
    %84 = vector.broadcast %83 : vector<1x256xf32> to vector<4x256xf32>
    %85 = arith.mulf %82, %84 : vector<4x256xf32>
    %86 = arith.addf %78, %85 : vector<4x256xf32>
    %87 = vector.extract_strided_slice %17 {offsets = [0, 20], sizes = [4, 256], strides = [1, 1]} : vector<4x324xf32> to vector<4x256xf32>
    %88 = vector.extract_strided_slice %19 {offsets = [0, 9], sizes = [4, 1], strides = [1, 1]} : vector<4x25xf32> to vector<4x1xf32>
    %89 = vector.broadcast %88 : vector<4x1xf32> to vector<4x256xf32>
    %90 = arith.mulf %89, %87 : vector<4x256xf32>
    %91 = vector.extract_strided_slice %18 {offsets = [4, 0], sizes = [1, 256], strides = [1, 1]} : vector<5x256xf32> to vector<1x256xf32>
    %92 = vector.broadcast %91 : vector<1x256xf32> to vector<4x256xf32>
    %93 = arith.mulf %90, %92 : vector<4x256xf32>
    %94 = arith.addf %86, %93 : vector<4x256xf32>
    %95 = vector.extract_strided_slice %17 {offsets = [0, 32], sizes = [4, 256], strides = [1, 1]} : vector<4x324xf32> to vector<4x256xf32>
    %96 = vector.extract_strided_slice %19 {offsets = [0, 10], sizes = [4, 1], strides = [1, 1]} : vector<4x25xf32> to vector<4x1xf32>
    %97 = vector.broadcast %96 : vector<4x1xf32> to vector<4x256xf32>
    %98 = arith.mulf %97, %95 : vector<4x256xf32>
    %99 = vector.extract_strided_slice %18 {offsets = [0, 0], sizes = [1, 256], strides = [1, 1]} : vector<5x256xf32> to vector<1x256xf32>
    %100 = vector.broadcast %99 : vector<1x256xf32> to vector<4x256xf32>
    %101 = arith.mulf %98, %100 : vector<4x256xf32>
    %102 = arith.addf %94, %101 : vector<4x256xf32>
    %103 = vector.extract_strided_slice %17 {offsets = [0, 33], sizes = [4, 256], strides = [1, 1]} : vector<4x324xf32> to vector<4x256xf32>
    %104 = vector.extract_strided_slice %19 {offsets = [0, 11], sizes = [4, 1], strides = [1, 1]} : vector<4x25xf32> to vector<4x1xf32>
    %105 = vector.broadcast %104 : vector<4x1xf32> to vector<4x256xf32>
    %106 = arith.mulf %105, %103 : vector<4x256xf32>
    %107 = vector.extract_strided_slice %18 {offsets = [1, 0], sizes = [1, 256], strides = [1, 1]} : vector<5x256xf32> to vector<1x256xf32>
    %108 = vector.broadcast %107 : vector<1x256xf32> to vector<4x256xf32>
    %109 = arith.mulf %106, %108 : vector<4x256xf32>
    %110 = arith.addf %102, %109 : vector<4x256xf32>
    %111 = vector.extract_strided_slice %17 {offsets = [0, 34], sizes = [4, 256], strides = [1, 1]} : vector<4x324xf32> to vector<4x256xf32>
    %112 = vector.extract_strided_slice %19 {offsets = [0, 12], sizes = [4, 1], strides = [1, 1]} : vector<4x25xf32> to vector<4x1xf32>
    %113 = vector.broadcast %112 : vector<4x1xf32> to vector<4x256xf32>
    %114 = arith.mulf %113, %111 : vector<4x256xf32>
    %115 = arith.addf %110, %114 : vector<4x256xf32>
    %116 = vector.extract_strided_slice %17 {offsets = [0, 35], sizes = [4, 256], strides = [1, 1]} : vector<4x324xf32> to vector<4x256xf32>
    %117 = vector.extract_strided_slice %19 {offsets = [0, 13], sizes = [4, 1], strides = [1, 1]} : vector<4x25xf32> to vector<4x1xf32>
    %118 = vector.broadcast %117 : vector<4x1xf32> to vector<4x256xf32>
    %119 = arith.mulf %118, %116 : vector<4x256xf32>
    %120 = vector.extract_strided_slice %18 {offsets = [3, 0], sizes = [1, 256], strides = [1, 1]} : vector<5x256xf32> to vector<1x256xf32>
    %121 = vector.broadcast %120 : vector<1x256xf32> to vector<4x256xf32>
    %122 = arith.mulf %119, %121 : vector<4x256xf32>
    %123 = arith.addf %115, %122 : vector<4x256xf32>
    %124 = vector.extract_strided_slice %17 {offsets = [0, 36], sizes = [4, 256], strides = [1, 1]} : vector<4x324xf32> to vector<4x256xf32>
    %125 = vector.extract_strided_slice %19 {offsets = [0, 14], sizes = [4, 1], strides = [1, 1]} : vector<4x25xf32> to vector<4x1xf32>
    %126 = vector.broadcast %125 : vector<4x1xf32> to vector<4x256xf32>
    %127 = arith.mulf %126, %124 : vector<4x256xf32>
    %128 = vector.extract_strided_slice %18 {offsets = [4, 0], sizes = [1, 256], strides = [1, 1]} : vector<5x256xf32> to vector<1x256xf32>
    %129 = vector.broadcast %128 : vector<1x256xf32> to vector<4x256xf32>
    %130 = arith.mulf %127, %129 : vector<4x256xf32>
    %131 = arith.addf %123, %130 : vector<4x256xf32>
    %132 = vector.extract_strided_slice %17 {offsets = [0, 48], sizes = [4, 256], strides = [1, 1]} : vector<4x324xf32> to vector<4x256xf32>
    %133 = vector.extract_strided_slice %19 {offsets = [0, 15], sizes = [4, 1], strides = [1, 1]} : vector<4x25xf32> to vector<4x1xf32>
    %134 = vector.broadcast %133 : vector<4x1xf32> to vector<4x256xf32>
    %135 = arith.mulf %134, %132 : vector<4x256xf32>
    %136 = vector.extract_strided_slice %18 {offsets = [0, 0], sizes = [1, 256], strides = [1, 1]} : vector<5x256xf32> to vector<1x256xf32>
    %137 = vector.broadcast %136 : vector<1x256xf32> to vector<4x256xf32>
    %138 = arith.mulf %135, %137 : vector<4x256xf32>
    %139 = arith.addf %131, %138 : vector<4x256xf32>
    %140 = vector.extract_strided_slice %17 {offsets = [0, 49], sizes = [4, 256], strides = [1, 1]} : vector<4x324xf32> to vector<4x256xf32>
    %141 = vector.extract_strided_slice %19 {offsets = [0, 16], sizes = [4, 1], strides = [1, 1]} : vector<4x25xf32> to vector<4x1xf32>
    %142 = vector.broadcast %141 : vector<4x1xf32> to vector<4x256xf32>
    %143 = arith.mulf %142, %140 : vector<4x256xf32>
    %144 = vector.extract_strided_slice %18 {offsets = [1, 0], sizes = [1, 256], strides = [1, 1]} : vector<5x256xf32> to vector<1x256xf32>
    %145 = vector.broadcast %144 : vector<1x256xf32> to vector<4x256xf32>
    %146 = arith.mulf %143, %145 : vector<4x256xf32>
    %147 = arith.addf %139, %146 : vector<4x256xf32>
    %148 = vector.extract_strided_slice %17 {offsets = [0, 50], sizes = [4, 256], strides = [1, 1]} : vector<4x324xf32> to vector<4x256xf32>
    %149 = vector.extract_strided_slice %19 {offsets = [0, 17], sizes = [4, 1], strides = [1, 1]} : vector<4x25xf32> to vector<4x1xf32>
    %150 = vector.broadcast %149 : vector<4x1xf32> to vector<4x256xf32>
    %151 = arith.mulf %150, %148 : vector<4x256xf32>
    %152 = arith.addf %147, %151 : vector<4x256xf32>
    %153 = vector.extract_strided_slice %17 {offsets = [0, 51], sizes = [4, 256], strides = [1, 1]} : vector<4x324xf32> to vector<4x256xf32>
    %154 = vector.extract_strided_slice %19 {offsets = [0, 18], sizes = [4, 1], strides = [1, 1]} : vector<4x25xf32> to vector<4x1xf32>
    %155 = vector.broadcast %154 : vector<4x1xf32> to vector<4x256xf32>
    %156 = arith.mulf %155, %153 : vector<4x256xf32>
    %157 = vector.extract_strided_slice %18 {offsets = [3, 0], sizes = [1, 256], strides = [1, 1]} : vector<5x256xf32> to vector<1x256xf32>
    %158 = vector.broadcast %157 : vector<1x256xf32> to vector<4x256xf32>
    %159 = arith.mulf %156, %158 : vector<4x256xf32>
    %160 = arith.addf %152, %159 : vector<4x256xf32>
    %161 = vector.extract_strided_slice %17 {offsets = [0, 52], sizes = [4, 256], strides = [1, 1]} : vector<4x324xf32> to vector<4x256xf32>
    %162 = vector.extract_strided_slice %19 {offsets = [0, 19], sizes = [4, 1], strides = [1, 1]} : vector<4x25xf32> to vector<4x1xf32>
    %163 = vector.broadcast %162 : vector<4x1xf32> to vector<4x256xf32>
    %164 = arith.mulf %163, %161 : vector<4x256xf32>
    %165 = vector.extract_strided_slice %18 {offsets = [4, 0], sizes = [1, 256], strides = [1, 1]} : vector<5x256xf32> to vector<1x256xf32>
    %166 = vector.broadcast %165 : vector<1x256xf32> to vector<4x256xf32>
    %167 = arith.mulf %164, %166 : vector<4x256xf32>
    %168 = arith.addf %160, %167 : vector<4x256xf32>
    %169 = vector.extract_strided_slice %17 {offsets = [0, 64], sizes = [4, 256], strides = [1, 1]} : vector<4x324xf32> to vector<4x256xf32>
    %170 = vector.extract_strided_slice %19 {offsets = [0, 20], sizes = [4, 1], strides = [1, 1]} : vector<4x25xf32> to vector<4x1xf32>
    %171 = vector.broadcast %170 : vector<4x1xf32> to vector<4x256xf32>
    %172 = arith.mulf %171, %169 : vector<4x256xf32>
    %173 = vector.extract_strided_slice %18 {offsets = [0, 0], sizes = [1, 256], strides = [1, 1]} : vector<5x256xf32> to vector<1x256xf32>
    %174 = vector.broadcast %173 : vector<1x256xf32> to vector<4x256xf32>
    %175 = arith.mulf %172, %174 : vector<4x256xf32>
    %176 = arith.addf %168, %175 : vector<4x256xf32>
    %177 = vector.extract_strided_slice %17 {offsets = [0, 65], sizes = [4, 256], strides = [1, 1]} : vector<4x324xf32> to vector<4x256xf32>
    %178 = vector.extract_strided_slice %19 {offsets = [0, 21], sizes = [4, 1], strides = [1, 1]} : vector<4x25xf32> to vector<4x1xf32>
    %179 = vector.broadcast %178 : vector<4x1xf32> to vector<4x256xf32>
    %180 = arith.mulf %179, %177 : vector<4x256xf32>
    %181 = vector.extract_strided_slice %18 {offsets = [1, 0], sizes = [1, 256], strides = [1, 1]} : vector<5x256xf32> to vector<1x256xf32>
    %182 = vector.broadcast %181 : vector<1x256xf32> to vector<4x256xf32>
    %183 = arith.mulf %180, %182 : vector<4x256xf32>
    %184 = arith.addf %176, %183 : vector<4x256xf32>
    %185 = vector.extract_strided_slice %17 {offsets = [0, 66], sizes = [4, 256], strides = [1, 1]} : vector<4x324xf32> to vector<4x256xf32>
    %186 = vector.extract_strided_slice %19 {offsets = [0, 22], sizes = [4, 1], strides = [1, 1]} : vector<4x25xf32> to vector<4x1xf32>
    %187 = vector.broadcast %186 : vector<4x1xf32> to vector<4x256xf32>
    %188 = arith.mulf %187, %185 : vector<4x256xf32>
    %189 = arith.addf %184, %188 : vector<4x256xf32>
    %190 = vector.extract_strided_slice %17 {offsets = [0, 67], sizes = [4, 256], strides = [1, 1]} : vector<4x324xf32> to vector<4x256xf32>
    %191 = vector.extract_strided_slice %19 {offsets = [0, 23], sizes = [4, 1], strides = [1, 1]} : vector<4x25xf32> to vector<4x1xf32>
    %192 = vector.broadcast %191 : vector<4x1xf32> to vector<4x256xf32>
    %193 = arith.mulf %192, %190 : vector<4x256xf32>
    %194 = vector.extract_strided_slice %18 {offsets = [3, 0], sizes = [1, 256], strides = [1, 1]} : vector<5x256xf32> to vector<1x256xf32>
    %195 = vector.broadcast %194 : vector<1x256xf32> to vector<4x256xf32>
    %196 = arith.mulf %193, %195 : vector<4x256xf32>
    %197 = arith.addf %189, %196 : vector<4x256xf32>
    %198 = vector.extract_strided_slice %17 {offsets = [0, 68], sizes = [4, 256], strides = [1, 1]} : vector<4x324xf32> to vector<4x256xf32>
    %199 = vector.extract_strided_slice %19 {offsets = [0, 24], sizes = [4, 1], strides = [1, 1]} : vector<4x25xf32> to vector<4x1xf32>
    %200 = vector.broadcast %199 : vector<4x1xf32> to vector<4x256xf32>
    %201 = arith.mulf %200, %198 : vector<4x256xf32>
    %202 = vector.extract_strided_slice %18 {offsets = [4, 0], sizes = [1, 256], strides = [1, 1]} : vector<5x256xf32> to vector<1x256xf32>
    %203 = vector.broadcast %202 : vector<1x256xf32> to vector<4x256xf32>
    %204 = arith.mulf %201, %203 : vector<4x256xf32>
    %205 = arith.addf %197, %204 : vector<4x256xf32>
    %c0_15 = arith.constant 0 : index
    %c0_16 = arith.constant 0 : index
    %206 = vector.load %arg6[%c0_15, %c0_16] : memref<4x1xf32, #tpu.memory_space<vmem>>, vector<4x1xf32>
    %207 = vector.broadcast %206 : vector<4x1xf32> to vector<4x256xf32>
    %208 = arith.mulf %205, %207 : vector<4x256xf32>
    %c0_17 = arith.constant 0 : index
    %c0_18 = arith.constant 0 : index
    %209 = vector.load %arg7[%c0_17, %c0_18] : memref<4x1xf32, #tpu.memory_space<vmem>>, vector<4x1xf32>
    %210 = vector.broadcast %209 : vector<4x1xf32> to vector<4x256xf32>
    %211 = arith.addf %208, %210 : vector<4x256xf32>
    %212 = arith.negf %211 : vector<4x256xf32>
    %213 = math.exp %212 : vector<4x256xf32>
    %cst_19 = arith.constant 1.000000e+00 : f32
    %214 = vector.broadcast %cst_19 : f32 to vector<4x256xf32>
    %215 = arith.addf %214, %213 : vector<4x256xf32>
    %216 = arith.divf %214, %215 : vector<4x256xf32>
    %217 = arith.mulf %211, %216 : vector<4x256xf32>
    %218 = vector.extract_strided_slice %15 {offsets = [0, 0], sizes = [2, 256], strides = [1, 1]} : vector<4x256xf32> to vector<2x256xf32>
    %219 = vector.extract_strided_slice %217 {offsets = [0, 0], sizes = [2, 256], strides = [1, 1]} : vector<4x256xf32> to vector<2x256xf32>
    %220 = vector.extract_strided_slice %15 {offsets = [2, 0], sizes = [2, 256], strides = [1, 1]} : vector<4x256xf32> to vector<2x256xf32>
    %221 = vector.extract_strided_slice %217 {offsets = [2, 0], sizes = [2, 256], strides = [1, 1]} : vector<4x256xf32> to vector<2x256xf32>
    %222 = tpu.concatenate %218, %219, %220, %221 in 0 : vector<2x256xf32>, vector<2x256xf32>, vector<2x256xf32>, vector<2x256xf32> -> vector<8x256xf32>
    %c0_20 = arith.constant 0 : index
    %c0_21 = arith.constant 0 : index
    %c0_22 = arith.constant 0 : index
    %223 = vector.load %arg10[%c0_20, %c0_21, %c0_22] : memref<1x8x256xf32, #tpu.memory_space<vmem>>, vector<1x8x256xf32>
    %224 = vector.shape_cast %223 : vector<1x8x256xf32> to vector<8x256xf32>
    %225 = vector.shape_cast %222 : vector<8x256xf32> to vector<1x8x256xf32>
    tpu.vector_store %arg10[%c0_20, %c0_21, %c0_22], %225 {strides = array<i32>} : memref<1x8x256xf32, #tpu.memory_space<vmem>>, vector<1x8x256xf32>,
    return
  }
  func.func @transform_0(%arg0: i32) -> (i32, i32, i32) {
    %c0_i32 = arith.constant 0 : i32
    %c0_i32_0 = arith.constant 0 : i32
    %c0_i32_1 = arith.constant 0 : i32
    return %arg0, %c0_i32, %c0_i32_0 : i32, i32, i32
  }
  func.func @transform_1(%arg0: i32) -> (i32, i32) {
    %c0_i32 = arith.constant 0 : i32
    %c0_i32_0 = arith.constant 0 : i32
    %c0_i32_1 = arith.constant 0 : i32
    return %c0_i32, %c0_i32_0 : i32, i32
  }
  func.func @transform_2(%arg0: i32) -> (i32, i32) {
    %c0_i32 = arith.constant 0 : i32
    %c0_i32_0 = arith.constant 0 : i32
    %c0_i32_1 = arith.constant 0 : i32
    return %c0_i32, %c0_i32_0 : i32, i32
  }
  func.func @transform_3(%arg0: i32) -> (i32, i32) {
    %c0_i32 = arith.constant 0 : i32
    %c0_i32_0 = arith.constant 0 : i32
    %c0_i32_1 = arith.constant 0 : i32
    return %c0_i32, %c0_i32_0 : i32, i32
  }
  func.func @transform_4(%arg0: i32) -> (i32, i32) {
    %c0_i32 = arith.constant 0 : i32
    %c0_i32_0 = arith.constant 0 : i32
    %c0_i32_1 = arith.constant 0 : i32
    return %c0_i32, %c0_i32_0 : i32, i32
  }
  func.func @transform_5(%arg0: i32) -> (i32, i32) {
    %c0_i32 = arith.constant 0 : i32
    %c0_i32_0 = arith.constant 0 : i32
    %c0_i32_1 = arith.constant 0 : i32
    return %c0_i32, %c0_i32_0 : i32, i32
  }
  func.func @transform_6(%arg0: i32) -> (i32, i32) {
    %c0_i32 = arith.constant 0 : i32
    %c0_i32_0 = arith.constant 0 : i32
    %c0_i32_1 = arith.constant 0 : i32
    return %c0_i32, %c0_i32_0 : i32, i32
  }
  func.func @transform_7(%arg0: i32) -> (i32, i32) {
    %c0_i32 = arith.constant 0 : i32
    %c0_i32_0 = arith.constant 0 : i32
    %c0_i32_1 = arith.constant 0 : i32
    return %c0_i32, %c0_i32_0 : i32, i32
  }
  func.func @transform_8(%arg0: i32) -> (i32, i32) {
    %c0_i32 = arith.constant 0 : i32
    %c0_i32_0 = arith.constant 0 : i32
    %c0_i32_1 = arith.constant 0 : i32
    return %c0_i32, %c0_i32_0 : i32, i32
  }
  func.func @transform_9(%arg0: i32) -> (i32, i32, i32) {
    %c0_i32 = arith.constant 0 : i32
    %c0_i32_0 = arith.constant 0 : i32
    %c0_i32_1 = arith.constant 0 : i32
    return %arg0, %c0_i32, %c0_i32_0 : i32, i32, i32
  }
}

</mosaic_0001>

<bundles_post_ra>
// kernel: squeeze.1
= control target key start
LH: loop header
LB: loop body
LE: loop exit
PB: predicated region body
PF: predicated region fallthrough
CT: control target
= control target key end

     0   :  { %s45_s8 = smov 20   ;;  %s46_s13 = smov 10   ;;  %vm3_vm0 = vcmask 39936   ;;  %vm9_vm1 = vcmask 203936   ;;  %vm15_vm2 = vcmask 162936   ;;  %vm21_vm3 = vcmask 121936   ;;  %s77_s0 = inlined_call_operand.vmem [shape: f32[4,5,5], index: 0, kind: input, shape index: {}]   ;;  %s78_s1 = inlined_call_operand.vmem [shape: f32[4,25], index: 1, kind: output, shape index: {}]  }
   0x1   :  { %v37_v0 = vld [vmem:[%s77_s0 + $0x4] ss:$8 sm:$0xf]   ;;  %v39_v1 = vld [vmem:[%s77_s0 + $0x2] ss:$8 sm:$0xf]  }
   0x2   :  { %7 = vrot.lane.b32.xlu0 %v37_v0, %s45_s8  ;;  %v38_v2 = vld [vmem:[%s77_s0 + $0x3] ss:$8 sm:$0xf]   ;;  %19 = vrot.lane.b32.xlu1 %v39_v1, %s46_s13  ;;  %v40_v3 = vld [vmem:[%s77_s0 + $0x1] ss:$8 sm:$0xf]  }
   0x3   :  { %v2_v4 = vld [vmem:[%s77_s0] ss:$8 sm:$0xf]   ;;  %s47_s0 = smov 15   ;;  %s48_s18 = smov 5   ;;  %vm27_vm4 = vcmask 80936  }
   0x4   :  { %4 = vst.msk [vmem:[#allocation0] sm:$0xf] %vm3_vm0, %v2_v4  }
   0x6   :  { %13 = vrot.lane.b32.xlu0 %v38_v2, %s47_s0  ;;  %25 = vrot.lane.b32.xlu1 %v40_v3, %s48_s18 }
  0x74   :  { %v8_v5 = vpop.permute.xlu0 %7   ;;  %v20_v6 = vpop.permute.xlu1 %19  }
  0x75   :  { %10 = vst.msk [vmem:[#allocation0] sm:$0xf] %vm9_vm1, %v8_v5  }
  0x78   :  { %v14_v7 = vpop.permute.xlu0 %13   ;;  %v26_v8 = vpop.permute.xlu1 %25  }
  0x79   :  { %16 = vst.msk [vmem:[#allocation0] sm:$0xf] %vm15_vm2, %v14_v7  }
  0x7a   :  { %22 = vst.msk [vmem:[#allocation0] sm:$0xf] %vm21_vm3, %v20_v6  }
  0x7b   :  { %28 = vst.msk [vmem:[#allocation0] sm:$0xf] %vm27_vm4, %v26_v8  }
  0x82   :  { %v33_v9 = vld [vmem:[#allocation0] sm:$0xf] }
  0x83   :  { %36 = vst [vmem:[%s78_s1] sm:$0xf] %v33_v9 }

// kernel: gsconv.1
= control target key start
LH: loop header
LB: loop body
LE: loop exit
PB: predicated region body
PF: predicated region fallthrough
CT: control target
= control target key end

     0   :  { %s1669_s30 = smov 0   ;;  %s2361_s0 = inlined_call_operand.vmem [shape: f32[2,4,256], index: 0, kind: input, shape index: {}]   ;;  %s2362_s1 = inlined_call_operand.vmem [shape: f32[4,4], index: 1, kind: input, shape index: {}]   ;;  %s2363_s2 = inlined_call_operand.vmem [shape: f32[4,1], index: 2, kind: input, shape index: {}]   ;;  %s2364_s3 = inlined_call_operand.vmem [shape: f32[4,1], index: 3, kind: input, shape index: {}]   ;;  %s2365_s4 = inlined_call_operand.vmem [shape: f32[4,25], index: 4, kind: input, shape index: {}]   ;;  %s2366_s5 = inlined_call_operand.vmem [shape: f32[4,1], index: 5, kind: input, shape index: {}]   ;;  %s2367_s6 = inlined_call_operand.vmem [shape: f32[4,1], index: 6, kind: input, shape index: {}]   ;;  %s2368_s7 = inlined_call_operand.vmem [shape: f32[1,256], index: 7, kind: input, shape index: {}]   ;;  %s2369_s8 = inlined_call_operand.vmem [shape: f32[5,256], index: 8, kind: input, shape index: {}]   ;;  %s2370_s9 = inlined_call_operand.vmem [shape: f32[2,8,256], index: 9, kind: output, shape index: {}]  }
   0x1 LB: > { %s1401_s10 = sadd.s32 4294967295, %s1548_s30   ;;  %p1405_p0 = scmp.ge.s32.totalorder %s1548_s30, 1  ;;  %s1548_s30 = sphi %s1669_s30, %s19_s30  }
   0x2   : > { %p287_p1 = scmp.lt.s32.totalorder %s1548_s30, 3 }
   0x4   : > { %p288_p2 = pnand %p1405_p0, %p287_p1 }
   0x6   : > { %291 = sbr.rel (%p288_p2) target bundleno = 696 (0x2b8), region = 56 }
   0xb   : > { %p323_p3 = scmp.lt.s32.totalorder %s1401_s10, 1  ;;  %v470_v0 = vlaneseq  ;;  %v1550_v1 = vmov 0.0   ;;  %v417_v2 = vld [vmem:[%s2363_s2] sm:$0xf]  ;;  %v1551_v4 = vmov 0   ;;  %v1552_v5 = vmov 1  }
   0xc   : > { %410 = vmatprep.mubr.f32.mxu0 %v1550_v1  ;;  %v1683_v3 = vld [vmem:[%s2365_s4] sm:$0xf]  ;;  %1498 = vset.pattern.permute.xlu0 %v1551_v4  ;;  %v461_v7 = vld [vmem:[%s2369_s8 + $0x8] sm:$0x1f]  ;;  %vm341_vm0 = vcmask 1043456   ;;  %v1553_v13 = vmov 2  }
   0xd   : > { %s2407_s10 = smov (!%p323_p3, %s1401_s10), 1  ;;  %1499 = vset.pattern.permute.xlu1 %v1552_v5  ;;  %v471_v6 = vshrl.u32 %v470_v0, 7  ;;  %420 = vperm.xlu0 %1498, %v417_v2   ;;  %v425_v8 = vld [vmem:[%s2364_s3] sm:$0xf]  ;;  %vm337_vm1 = vcmask 31744   ;;  %s1554_s24 = smov 1  }
   0xe   : > { %483 = vperm.xlu1 %1499, %v1683_v3   ;;  %s1419_s16 = sshll.u32 %s2407_s10, 3  ;;  %v334_v14 = vld [vmem:[%s2362_s1] sm:$0xf]  ;;  %v1555_v19 = vmov 3   ;;  %v1556_v20 = vmov 12   ;;  %s1557_s27 = smov 3  }
   0xf   : > { %v491_v9 = vsub.s32 1, %v471_v6  ;;  %s327_s21 = scalar_lea.vmem %s2361_s0, %s1419_s16  ;;  %v460_v15 = vld [vmem:[%s2369_s8] sm:$0x1f]  ;;  %v559_v17 = vsub.s32 3, %v471_v6  ;;  %v604_v22 = vsub.s32 4, %v471_v6  ;;  %v472_v24 = vsub.s32 0, %v471_v6 }
  0x10   : > { %v333_v10 = vld [vmem:[%s327_s21] sm:$0xff]  ;;  %v1558_v25 = vmov 4   ;;  %s1559_s28 = smov 4   ;;  %s1560_s29 = smov 16   ;;  %v1561_v28 = vmov 5   ;;  %v1564_v30 = vmov 6  }
  0x11   : > { %v1699_v11 = vrot.slane %v461_v7, %v491_v9  ;;  %v336_v12 = vcombine.high %v333_v10, %v333_v10  ;;  %428 = vperm.xlu0 %1498, %v425_v8   ;;  %v1712_v16 = vrot.slane %v460_v15, %v491_v9  ;;  %v1716_v18 = vrot.slane %v460_v15, %v559_v17  ;;  %s1562_s7 = smov 17   ;;  %s1563_s11 = smov 19   ;;  %v1292_v57 = vld [vmem:[%s2366_s5] sm:$0xf] }
  0x12   : > { %1500 = vset.pattern.permute.xlu1 %v1553_v13  ;;  %v1719_v21 = vrot.slane %v461_v7, %v559_v17  ;;  %v1722_v23 = vrot.slane %v460_v15, %v604_v22  ;;  %v1726_v26 = vrot.slane %v460_v15, %v472_v24  ;;  %v1729_v27 = vrot.slane %v461_v7, %v604_v22  ;;  %s1565_s12 = smov 20   ;;  %s1566_s13 = smov 32  }
  0x13   : > { %501 = vrot.lane.b32.xlu1 %v1699_v11, %s1554_s24  ;;  %1410 = vmatprep.subr.msk.mxu0 %vm341_vm0, %v336_v12  ;;  %v1735_v29 = vrot.slane %v461_v7, %v472_v24  ;;  %v1567_v31 = vmov 7   ;;  %s1568_s14 = smov 33   ;;  %v1569_v32 = vmov 15   ;;  %v1570_v33 = vmov 8   ;;  %s1573_s15 = smov 48  }
  0x14   : > { %1411 = vmatpush1.msk.msra.mxu0 %vm341_vm0, %v333_v10  ;;  %2384 = vst [vmem:[#allocation2_spill] sm:$0xff] %v1726_v26  ;;  %v1571_v34 = vmov 9   ;;  %v1572_v35 = vmov 16   ;;  %v1574_v36 = vmov 17   ;;  %v1575_v37 = vmov 10   ;;  %s1576_s16 = smov 49  }
  0x15   : > { %1412 = vmatmul.mubr.msk.f32.vlgmr.msra.gmra.mxu0 %vm337_vm1, %v334_v14  ;;  %465 = vperm.xlu0 %1498, %v1683_v3   ;;  %2385 = vst [vmem:[#allocation3_spill] sm:$0xff] %v1735_v29  ;;  %v1577_v38 = vmov 20   ;;  %v1578_v39 = vmov 11   ;;  %v1579_v40 = vmov 21   ;;  %v1580_v41 = vmov 13   ;;  %s1581_s17 = smov 64  }
  0x16   : > { %v1582_v42 = vmov 22   ;;  %v1583_v43 = vmov 14   ;;  %s1584_s18 = smov 65   ;;  %s1585_s19 = smov 35   ;;  %v1586_v44 = vmov 18   ;;  %v1590_v45 = vmov 19  }
  0x17   : > { %528 = vperm.xlu1 %1500, %v1683_v3   ;;  %s1587_s20 = smov 67   ;;  %s1588_s21 = smov 68   ;;  %v1592_v47 = vmov 23   ;;  %v1594_v54 = vmov 24   ;;  %vm453_vm2 = vcmask 277504   ;;  %vm503_vm3 = vcmask 7168  }
  0x18   : > { %s1589_s22 = smov 36   ;;  %s1591_s23 = smov 51   ;;  %vm571_vm4 = vcmask 23552   ;;  %vm652_vm5 = vcmask 130048   ;;  %vm687_vm6 = vcmask 138240   ;;  %vm745_vm7 = vcmask 154624  }
  0x19   : > { %499 = vrot.lane.b32.xlu0 %v1712_v16, %s1554_s24  ;;  %s1593_s24 = smov 52   ;;  %s1612_s25 = smov 95   ;;  %vm780_vm8 = vcmask 162816   ;;  %vm850_vm9 = vcmask 269312   ;;  %vm908_vm10 = vcmask 285696   ;;  %vm978_vm11 = vcmask 392192  }
  0x1a   : > { %1510 = vset.pattern.permute.xlu0 %v1556_v20  ;;  %s1613_s26 = smov 93   ;;  %vm1106_vm12 = vcmask 424960   ;;  %vm1175_vm13 = vcmask 531456   ;;  %vm1233_vm14 = vcmask 547840   ;;  %vm1268_vm15 = vcmask 556032  }
  0x1b   : > { %1501 = vset.pattern.permute.xlu1 %v1555_v19 }
  0x1c   : > { %551 = vperm.xlu1 %1501, %v1683_v3  }
  0x1d   : > { %567 = vrot.lane.b32.xlu0 %v1716_v18, %s1557_s27 }
  0x20   : > { %569 = vrot.lane.b32.xlu1 %v1719_v21, %s1557_s27  ;;  %s1595_s27 = smov 34  }
  0x21   : > { %1502 = vset.pattern.permute.xlu1 %v1558_v25  ;;  %612 = vrot.lane.b32.xlu0 %v1722_v23, %s1559_s28 }
  0x24   : > { %596 = vperm.xlu1 %1502, %v1683_v3  }
  0x25   : > { %648 = vrot.lane.b32.xlu0 %v1726_v26, %s1560_s29 }
  0x28   : > { %614 = vrot.lane.b32.xlu1 %v1729_v27, %s1559_s28  ;;  %s1596_s28 = smov 126  }
  0x29   : > { %1503 = vset.pattern.permute.xlu1 %v1561_v28  ;;  %683 = vrot.lane.b32.xlu0 %v1712_v16, %s1562_s7 }
  0x2c   : > { %640 = vperm.xlu1 %1503, %v1683_v3  }
  0x2d   : > { %741 = vrot.lane.b32.xlu0 %v1716_v18, %s1563_s11 }
  0x30   : > { %650 = vrot.lane.b32.xlu1 %v1735_v29, %s1560_s29  ;;  %s1597_s29 = smov 94  }
  0x31   : > { %1504 = vset.pattern.permute.xlu1 %v1564_v30  ;;  %776 = vrot.lane.b32.xlu0 %v1722_v23, %s1565_s12 }
  0x34   : > { %677 = vperm.xlu1 %1504, %v1683_v3  }
  0x35   : > { %811 = vrot.lane.b32.xlu0 %v1726_v26, %s1566_s13 }
  0x38   : > { %685 = vrot.lane.b32.xlu1 %v1699_v11, %s1562_s7  ;;  %s1598_s7 = smov 110  }
  0x39   : > { %1505 = vset.pattern.permute.xlu1 %v1567_v31  ;;  %875 = vperm.xlu0 %1510, %v1683_v3  }
  0x3c   : > { %712 = vperm.xlu1 %1505, %v1683_v3  }
  0x3d   : > { %848 = vrot.lane.b32.xlu0 %v1699_v11, %s1568_s14 }
  0x3e   : > { %1513 = vset.pattern.permute.xlu0 %v1569_v32 }
  0x40   : > { %1506 = vset.pattern.permute.xlu1 %v1570_v33 }
  0x41   : > { %735 = vperm.xlu1 %1506, %v1683_v3   ;;  %968 = vperm.xlu0 %1513, %v1683_v3  }
  0x45   : > { %743 = vrot.lane.b32.xlu1 %v1719_v21, %s1563_s11  ;;  %1514 = vset.pattern.permute.xlu0 %v1572_v35  ;;  %s1599_s11 = smov 62  }
  0x46   : > { %1507 = vset.pattern.permute.xlu1 %v1571_v34  ;;  %1003 = vperm.xlu0 %1514, %v1683_v3  }
  0x49   : > { %770 = vperm.xlu1 %1507, %v1683_v3  }
  0x4a   : > { %974 = vrot.lane.b32.xlu0 %v1726_v26, %s1573_s15 }
  0x4b   : > { %1515 = vset.pattern.permute.xlu0 %v1574_v36 }
  0x4d   : > { %778 = vrot.lane.b32.xlu1 %v1729_v27, %s1565_s12  ;;  %s1600_s12 = smov 78  }
  0x4e   : > { %1508 = vset.pattern.permute.xlu1 %v1575_v37  ;;  %1038 = vperm.xlu0 %1515, %v1683_v3  }
  0x51   : > { %805 = vperm.xlu1 %1508, %v1683_v3  }
  0x52   : > { %1011 = vrot.lane.b32.xlu0 %v1699_v11, %s1576_s16 }
  0x53   : > { %1518 = vset.pattern.permute.xlu0 %v1577_v38 }
  0x55   : > { %813 = vrot.lane.b32.xlu1 %v1735_v29, %s1566_s13  ;;  %s1601_s13 = smov 127  }
  0x56   : > { %1509 = vset.pattern.permute.xlu1 %v1578_v39  ;;  %1131 = vperm.xlu0 %1518, %v1683_v3  }
  0x59   : > { %840 = vperm.xlu1 %1509, %v1683_v3  }
  0x5a   : > { %1519 = vset.pattern.permute.xlu0 %v1579_v40 }
  0x5b   : > { %1165 = vperm.xlu0 %1519, %v1683_v3  }
  0x5d   : > { %1511 = vset.pattern.permute.xlu1 %v1580_v41 }
  0x5e   : > { %898 = vperm.xlu1 %1511, %v1683_v3  }
  0x5f   : > { %1137 = vrot.lane.b32.xlu0 %v1726_v26, %s1581_s17 }
  0x60   : > { %1520 = vset.pattern.permute.xlu0 %v1582_v42 }
  0x62   : > { %846 = vrot.lane.b32.xlu1 %v1712_v16, %s1568_s14  ;;  %s1602_s14 = smov 125  }
  0x63   : > { %1512 = vset.pattern.permute.xlu1 %v1583_v43  ;;  %1200 = vperm.xlu0 %1520, %v1683_v3  }
  0x66   : > { %933 = vperm.xlu1 %1512, %v1683_v3  }
  0x67   : > { %1173 = vrot.lane.b32.xlu0 %v1699_v11, %s1584_s18 }
  0x68   : > { %1524 = vset.pattern.permute.xlu0 %v1551_v4 }
  0x6a   : > { %904 = vrot.lane.b32.xlu1 %v1716_v18, %s1585_s19 }
  0x6b   : > { %1516 = vset.pattern.permute.xlu1 %v1586_v44  ;;  %1229 = vrot.lane.b32.xlu0 %v1716_v18, %s1587_s20 }
  0x6e   : > { %906 = vrot.lane.b32.xlu1 %v1719_v21, %s1585_s19  ;;  %s1606_s19 = smov 112  }
  0x6f   : > { %1264 = vrot.lane.b32.xlu0 %v1722_v23, %s1588_s21 }
  0x72   : > { %939 = vrot.lane.b32.xlu1 %v1722_v23, %s1589_s22 }
  0x76   : > { %941 = vrot.lane.b32.xlu1 %v1729_v27, %s1589_s22  ;;  %s1609_s22 = smov 109  }
  0x7a   : > { %976 = vrot.lane.b32.xlu1 %v1735_v29, %s1573_s15  ;;  %s1603_s15 = smov 92  }
  0x7e   : > { %1061 = vperm.xlu1 %1516, %v1683_v3  }
  0x82   : > { %1009 = vrot.lane.b32.xlu1 %v1712_v16, %s1576_s16  ;;  %s1604_s16 = smov 124  }
  0x83   : > { %1517 = vset.pattern.permute.xlu1 %v1590_v45 }
  0x86   : > { %1096 = vperm.xlu1 %1517, %v1683_v3  }
  0x88   : > { %v421_v0 = vpop.permute.xlu0 %420 }
  0x89   : > { %v1789_v46 = vpop.permute.xlu1 %483 }
  0x8a   : > { %1067 = vrot.lane.b32.xlu1 %v1716_v18, %s1591_s23 }
  0x8b   : > { %1521 = vset.pattern.permute.xlu1 %v1592_v47 }
  0x8d   : > { %v1792_v48 = vpop.permute.xlu1 %501 }
  0x8e   : > { %1069 = vrot.lane.b32.xlu1 %v1719_v21, %s1591_s23  ;;  %s1610_s23 = smov 108  }
  0x92   : > { %v1795_v49 = vpop.permute.xlu1 %528  ;;  %1102 = vrot.lane.b32.xlu1 %v1722_v23, %s1593_s24 }
  0x96   : > { %1104 = vrot.lane.b32.xlu1 %v1729_v27, %s1593_s24  ;;  %s1611_s24 = smov 96  }
  0x97   : > { %v1799_v50 = vpop.permute.xlu1 %551 }
  0x9a   : > { %1139 = vrot.lane.b32.xlu1 %v1735_v29, %s1581_s17 }
  0x9b   : > { %v1803_v51 = vpop.permute.xlu1 %569 }
  0x9e   : > { %1223 = vperm.xlu1 %1521, %v1683_v3  }
  0x9f   : > { %v1806_v52 = vpop.permute.xlu1 %596 }
  0xa2   : > { %1171 = vrot.lane.b32.xlu1 %v1712_v16, %s1584_s18  ;;  %s1605_s18 = smov 79  }
  0xa3   : > { %v1810_v53 = vpop.permute.xlu1 %614  ;;  %1522 = vset.pattern.permute.xlu1 %v1594_v54 }
  0xa6   : > { %1258 = vperm.xlu1 %1522, %v1683_v3  }
  0xa7   : > { %v1813_v55 = vpop.permute.xlu1 %640 }
  0xaa   : > { %1231 = vrot.lane.b32.xlu1 %v1719_v21, %s1587_s20  ;;  %s1607_s20 = smov 111  }
  0xab   : > { %1523 = vset.pattern.permute.xlu1 %v1551_v4  ;;  %v1818_v56 = vpop.permute.xlu1 %650  ;;  %v429_v4 = vpop.permute.xlu0 %428 }
  0xae   : > { %1266 = vrot.lane.b32.xlu1 %v1729_v27, %s1588_s21  ;;  %s1608_s21 = smov 77  }
  0xaf   : > { %v1825_v58 = vpop.permute.xlu1 %677  ;;  %v1865_v31 = vpop.permute.xlu0 %465 }
  0xb0   : > { %2388 = vst [vmem:[#allocation6_spill] sm:$0xff] %v1865_v31 }
  0xb2   : > { %1295 = vperm.xlu1 %1523, %v1292_v57  }
  0xb3   : > { %v1827_v59 = vpop.permute.xlu1 %685  ;;  %v1869_v33 = vpop.permute.xlu0 %499 }
  0xb7   : > { %v1829_v60 = vpop.permute.xlu1 %712  ;;  %v1873_v35 = vpop.permute.xlu0 %567 }
  0xbb   : > { %v1875_v36 = vpop.permute.xlu0 %612 }
  0xbc   : > { %v1831_v61 = vpop.permute.xlu1 %735 }
  0xbf   : > { %v1879_v38 = vpop.permute.xlu0 %648 }
  0xc0   : > { %v1833_v62 = vpop.permute.xlu1 %743 }
  0xc3   : > { %v1883_v40 = vpop.permute.xlu0 %683 }
  0xc4   : > { %v1835_v63 = vpop.permute.xlu1 %770 }
  0xc7   : > { %v1885_v41 = vpop.permute.xlu0 %741 }
  0xc8   : > { %v1837_v3 = vpop.permute.xlu1 %778 }
  0xcb   : > { %v1889_v43 = vpop.permute.xlu0 %776 }
  0xcc   : > { %v1839_v11 = vpop.permute.xlu1 %805 }
  0xcf   : > { %v1893_v45 = vpop.permute.xlu0 %811 }
  0xd0   : > { %v1841_v12 = vpop.permute.xlu1 %813 }
  0xd3   : > { %v1895_v47 = vpop.permute.xlu0 %875 }
  0xd4   : > { %v1843_v13 = vpop.permute.xlu1 %840 }
  0xd5   : > { %v412_v1 = vpop.f32.mrf.mxu0 }
  0xd6   : > { %v423_v2 = vmul.f32 %v421_v0, %v412_v1 }
  0xd7   : > { %v414_v5 = vpop.f32.mrf.mxu0  ;;  %v1899_v57 = vpop.permute.xlu0 %848 }
  0xd8   : > { %v431_v6 = vadd.f32 %v429_v4, %v423_v2  ;;  %v424_v7 = vmul.f32 %v421_v0, %v414_v5 }
  0xd9   : > { %v1845_v18 = vpop.permute.xlu1 %898 }
  0xda   : > { %v1413_v8 = vmul.f32 -1.442695, %v431_v6  ;;  %v432_v9 = vadd.f32 %v429_v4, %v424_v7 }
  0xdb   : > { %v1903_v1 = vpop.permute.xlu0 %968 }
  0xdc   : > { %1526 = vpow2.f32 %v1413_v8  ;;  %v1414_v10 = vmul.f32 -1.442695, %v432_v9 }
  0xdd   : > { %v1847_v19 = vpop.permute.xlu1 %846 }
  0xde   : > { %1528 = vpow2.f32 %v1414_v10 }
  0xdf   : > { %v1907_v4 = vpop.permute.xlu0 %1003 }
  0xe1   : > { %v1851_v22 = vpop.permute.xlu1 %933 }
  0xe5   : > { %v1857_v25 = vpop.permute.xlu1 %904 }
  0xe9   : > { %v1527_v14 = vpop.eup %1526  ;;  %v1859_v27 = vpop.permute.xlu1 %906 }
  0xea   : > { %v439_v15 = vadd.f32 1.0, %v1527_v14 }
  0xeb   : > { %v1529_v16 = vpop.eup %1528 }
  0xec   : > { %1530 = vrcp.f32 %v439_v15  ;;  %v440_v17 = vadd.f32 1.0, %v1529_v16 }
  0xed   : > { %v1861_v28 = vpop.permute.xlu1 %939 }
  0xee   : > { %1532 = vrcp.f32 %v440_v17 }
  0xf1   : > { %v1863_v30 = vpop.permute.xlu1 %941 }
  0xf5   : > { %v1867_v32 = vpop.permute.xlu1 %976 }
  0xf9   : > { %v1531_v20 = vpop.eup %1530  ;;  %v1871_v34 = vpop.permute.xlu1 %1061 }
  0xfa   : > { %v1849_v21 = vmul.f32 %v1531_v20, %v431_v6  ;;  %v1911_v6 = vpop.permute.xlu0 %974 }
  0xfb   : > { %v1533_v23 = vpop.eup %1532 }
  0xfc   : > { %2386 = vst [vmem:[#allocation4_spill] sm:$0xff] %v1849_v21  ;;  %449 = vrot.lane.b32.xlu1 %v1849_v21, %s1595_s27  ;;  %v1854_v24 = vmul.f32 %v1533_v23, %v432_v9 }
  0xfd   : > { %v1877_v37 = vpop.permute.xlu1 %1009 }
  0xfe   : > { %2387 = vst [vmem:[#allocation5_spill] sm:$0xff] %v1854_v24  ;;  %v1915_v8 = vpop.permute.xlu0 %1038 }
 0x100   : > { %451 = vrot.lane.b32.xlu1 %v1854_v24, %s1595_s27  ;;  %s1614_s27 = smov 80  }
 0x101   : > { %v1881_v39 = vpop.permute.xlu1 %1096 }
 0x102   : > { %v1919_v10 = vpop.permute.xlu0 %1011 }
 0x105   : > { %v1887_v42 = vpop.permute.xlu1 %1067 }
 0x106   : > { %v1923_v15 = vpop.permute.xlu0 %1131 }
 0x109   : > { %v1891_v44 = vpop.permute.xlu1 %1069 }
 0x10a   : > { %2389 = vst [vmem:[#allocation7_spill] sm:$0xff] %v1891_v44  ;;  %v1927_v17 = vpop.permute.xlu0 %1165 }
 0x10d   : > { %v1897_v54 = vpop.permute.xlu1 %1102 }
 0x10e   : > { %v1931_v23 = vpop.permute.xlu0 %1137 }
 0x111   : > { %v1901_v0 = vpop.permute.xlu1 %1104 }
 0x112   : > { %2390 = vst [vmem:[#allocation8_spill] sm:$0xff] %v1901_v0 }
 0x115   : > { %v1905_v2 = vpop.permute.xlu1 %1139 }
 0x116   : > { %2391 = vst [vmem:[#allocation9_spill] sm:$0xff] %v1905_v2 }
 0x119   : > { %v1909_v5 = vpop.permute.xlu1 %1223 }
 0x11d   : > { %v1913_v7 = vpop.permute.xlu1 %1171 }
 0x121   : > { %v1917_v9 = vpop.permute.xlu1 %1258 }
 0x125   : > { %v1921_v14 = vpop.permute.xlu1 %1231 }
 0x126   : > { %2392 = vst [vmem:[#allocation10_spill] sm:$0xff] %v1921_v14 }
 0x129   : > { %v1925_v16 = vpop.permute.xlu1 %1266 }
 0x12a   : > { %2393 = vst [vmem:[#allocation11_spill] sm:$0xff] %v1925_v16 }
 0x12d   : > { %v1929_v20 = vpop.permute.xlu1 %1295 }
 0x12e   : > { %2394 = vst [vmem:[#allocation12_spill] sm:$0xff] %v1929_v20  ;;  %v1941_v20 = vpop.permute.xlu0 %1200 }
 0x16e   : > { %v450_v24 = vpop.permute.xlu1 %449 }
 0x16f   : > { %v1934_v21 = vsel %vm453_vm2, 0.0, %v450_v24 }
 0x170   : > { %v531_v29 = vmul.f32 %v1795_v49, %v1934_v21  ;;  %v878_v26 = vmul.f32 %v1895_v47, %v1934_v21  ;;  %v715_v16 = vmul.f32 %v1829_v60, %v1934_v21  ;;  %v1203_v14 = vmul.f32 %v1941_v20, %v1934_v21 }
 0x171   : > { %v486_v0 = vmul.f32 %v1789_v46, %v1934_v21 }
 0x172   : > { %537 = vrot.lane.b32.xlu0 %v531_v29, %s1596_s28  ;;  %884 = vrot.lane.b32.xlu1 %v878_v26, %s1597_s29  ;;  %v452_v31 = vpop.permute.xlu1 %451  ;;  %v1041_v26 = vmul.f32 %v1915_v8, %v1934_v21 }
 0x173   : > { %v1948_v2 = vsel %vm453_vm2, %v450_v24, %v452_v31  ;;  %v508_v24 = vmul.f32 %v1869_v33, %v486_v0  ;;  %v554_v0 = vmul.f32 %v1799_v50, %v1934_v21 }
 0x174   : > { %v532_v29 = vmul.f32 %v1795_v49, %v1948_v2 }
 0x176   : > { %721 = vrot.lane.b32.xlu0 %v715_v16, %s1598_s7  ;;  %1209 = vrot.lane.b32.xlu1 %v1203_v14, %s1599_s11  ;;  %v716_v16 = vmul.f32 %v1829_v60, %v1948_v2  ;;  %v1963_v14 = vsel %vm453_vm2, %v452_v31, 0.0  ;;  %v576_v31 = vmul.f32 %v1873_v35, %v554_v0  ;;  %v643_v0 = vmul.f32 %v1813_v55, %v1934_v21 }
 0x177   : > { %v533_v44 = vmul.f32 %v1795_v49, %v1963_v14  ;;  %v1006_v49 = vmul.f32 %v1907_v4, %v1934_v21  ;;  %vm543_vm2 = vcmask 1031168  }
 0x17a   : > { %1047 = vrot.lane.b32.xlu0 %v1041_v26, %s1600_s12  ;;  %539 = vrot.lane.b32.xlu1 %v532_v29, %s1596_s28  ;;  %v880_v26 = vmul.f32 %v1895_v47, %v1963_v14  ;;  %v936_v29 = vmul.f32 %v1851_v22, %v1934_v21 }
 0x17e   : > { %514 = vrot.lane.b32.xlu0 %v508_v24, %s1601_s13  ;;  %723 = vrot.lane.b32.xlu1 %v716_v16, %s1598_s7  ;;  %v948_v24 = vmul.f32 %v1861_v28, %v936_v29  ;;  %v599_v16 = vmul.f32 %v1806_v52, %v1934_v21  ;;  %v657_v29 = vmul.f32 %v1879_v38, %v643_v0 }
 0x17f   : > { %v717_v0 = vmul.f32 %v1829_v60, %v1963_v14  ;;  %v487_v60 = vmul.f32 %v1789_v46, %v1948_v2 }
 0x182   : > { %541 = vrot.lane.b32.xlu0 %v533_v44, %s1596_s28  ;;  %888 = vrot.lane.b32.xlu1 %v880_v26, %s1597_s29  ;;  %v620_v44 = vmul.f32 %v1875_v36, %v599_v16  ;;  %v1018_v26 = vmul.f32 %v1877_v37, %v1006_v49  ;;  %v1064_v16 = vmul.f32 %v1871_v34, %v1934_v21  ;;  %s1615_s28 = smov 76  }
 0x186   : > { %582 = vrot.lane.b32.xlu0 %v576_v31, %s1602_s14  ;;  %954 = vrot.lane.b32.xlu1 %v948_v24, %s1603_s15  ;;  %v1042_v31 = vmul.f32 %v1915_v8, %v1948_v2  ;;  %v680_v24 = vmul.f32 %v1825_v58, %v1934_v21 }
 0x188   : > { %v692_v49 = vmul.f32 %v1883_v40, %v680_v24 }
 0x18a   : > { %626 = vrot.lane.b32.xlu0 %v620_v44, %s1604_s16  ;;  %1024 = vrot.lane.b32.xlu1 %v1018_v26, %s1605_s18  ;;  %v1076_v44 = vmul.f32 %v1887_v42, %v1064_v16  ;;  %v1134_v26 = vmul.f32 %v1923_v15, %v1934_v21  ;;  %v1205_v16 = vmul.f32 %v1941_v20, %v1963_v14 }
 0x18e   : > { %663 = vrot.lane.b32.xlu0 %v657_v29, %s1606_s19  ;;  %1049 = vrot.lane.b32.xlu1 %v1042_v31, %s1600_s12  ;;  %v1146_v29 = vmul.f32 %v1931_v23, %v1134_v26  ;;  %v738_v31 = vmul.f32 %v1831_v61, %v1934_v21 }
 0x190   : > { %v750_v24 = vmul.f32 %v1885_v41, %v738_v31  ;;  %v555_v31 = vmul.f32 %v1799_v50, %v1948_v2 }
 0x192   : > { %698 = vrot.lane.b32.xlu0 %v692_v49, %s1607_s20  ;;  %1082 = vrot.lane.b32.xlu1 %v1076_v44, %s1608_s21  ;;  %v773_v49 = vmul.f32 %v1835_v63, %v1934_v21  ;;  %v504_v44 = vsel %vm503_vm3, %v1869_v33, %v1792_v48  ;;  %vm727_vm3 = vcmask 900096  }
 0x194   : > { %v785_v26 = vmul.f32 %v1889_v43, %v773_v49  ;;  %v843_v49 = vmul.f32 %v1843_v13, %v1934_v21 }
 0x196   : > { %725 = vrot.lane.b32.xlu0 %v717_v0, %s1598_s7  ;;  %1152 = vrot.lane.b32.xlu1 %v1146_v29, %s1581_s17  ;;  %v509_v0 = vmul.f32 %v504_v44, %v487_v60  ;;  %v808_v29 = vmul.f32 %v1839_v11, %v1934_v21  ;;  %v600_v60 = vmul.f32 %v1806_v52, %v1948_v2  ;;  %s1617_s7 = smov 61  }
 0x197   : > { %v616_v44 = vsel %vm337_vm1, %v1875_v36, %v1810_v53  ;;  %vm815_vm1 = vcmask 261120  }
 0x198   : > { %v820_v33 = vmul.f32 %v1893_v45, %v808_v29  ;;  %v653_v29 = vsel %vm652_vm5, %v1879_v38, %v1818_v56  ;;  %vm1013_vm5 = vcmask 400384  }
 0x19a   : > { %756 = vrot.lane.b32.xlu0 %v750_v24, %s1609_s22  ;;  %1213 = vrot.lane.b32.xlu1 %v1205_v16, %s1599_s11  ;;  %v572_v24 = vsel %vm571_vm4, %v1873_v35, %v1803_v51  ;;  %v855_v35 = vmul.f32 %v1847_v19, %v843_v49  ;;  %vm943_vm4 = vcmask 293888  }
 0x19b   : > { %v577_v16 = vmul.f32 %v572_v24, %v555_v31  ;;  %v879_v31 = vmul.f32 %v1895_v47, %v1948_v2  ;;  %v901_v24 = vmul.f32 %v1845_v18, %v1934_v21  ;;  %v971_v47 = vmul.f32 %v1903_v1, %v1934_v21 }
 0x19d   : > { %v913_v38 = vmul.f32 %v1857_v25, %v901_v24 }
 0x19e   : > { %791 = vrot.lane.b32.xlu0 %v785_v26, %s1610_s23  ;;  %516 = vrot.lane.b32.xlu1 %v509_v0, %s1601_s13  ;;  %v621_v26 = vmul.f32 %v616_v44, %v600_v60  ;;  %v644_v0 = vmul.f32 %v1813_v55, %v1948_v2  ;;  %v739_v60 = vmul.f32 %v1831_v61, %v1948_v2 }
 0x19f   : > { %v746_v44 = vsel %vm745_vm7, %v1885_v41, %v1833_v62  ;;  %v1099_v41 = vmul.f32 %v1881_v39, %v1934_v21  ;;  %vm1053_vm7 = vcmask 637952  }
 0x1a0   : > { %v658_v36 = vmul.f32 %v653_v29, %v644_v0  ;;  %v781_v0 = vsel %vm780_vm8, %v1889_v43, %v1837_v3  ;;  %v1043_v29 = vmul.f32 %v1915_v8, %v1963_v14  ;;  %v1168_v43 = vmul.f32 %v1927_v17, %v1934_v21 }
 0x1a1   : > { %v1111_v24 = vmul.f32 %v1897_v54, %v1099_v41  ;;  %v844_v8 = vmul.f32 %v1843_v13, %v1948_v2  ;;  %v979_v41 = vsel %vm978_vm11, %v1911_v6, %v1867_v32  ;;  %vm1141_vm8 = vcmask 523264  }
 0x1a2   : > { %826 = vrot.lane.b32.xlu0 %v820_v33, %s1611_s24  ;;  %584 = vrot.lane.b32.xlu1 %v577_v16, %s1602_s14  ;;  %v681_v33 = vmul.f32 %v1825_v58, %v1948_v2  ;;  %v688_v16 = vsel %vm687_vm6, %v1883_v40, %v1827_v59  ;;  %v983_v40 = vmul.f32 %v1911_v6, %v971_v47  ;;  %vm1071_vm6 = vcmask 416768  }
 0x1a3   : > { %v902_v47 = vmul.f32 %v1845_v18, %v1948_v2  ;;  %v556_v6 = vmul.f32 %v1799_v50, %v1963_v14  ;;  %v2396_v50 = vld [vmem:[#allocation8_spill] sm:$0xff]  ;;  %vm632_vm11 = vcmask 1014784  }
 0x1a4   : > { %v693_v49 = vmul.f32 %v688_v16, %v681_v33  ;;  %v851_v16 = vsel %vm850_vm9, %v1847_v19, %v1899_v57  ;;  %v1204_v19 = vmul.f32 %v1941_v20, %v1948_v2  ;;  %v972_v20 = vmul.f32 %v1903_v1, %v1948_v2 }
 0x1a5   : > { %vm520_vm9 = vcmask 1039360  }
 0x1a6   : > { %861 = vrot.lane.b32.xlu0 %v855_v35, %s1612_s25  ;;  %628 = vrot.lane.b32.xlu1 %v621_v26, %s1604_s16  ;;  %v751_v35 = vmul.f32 %v746_v44, %v739_v60  ;;  %v774_v26 = vmul.f32 %v1835_v63, %v1948_v2  ;;  %v2096_v60 = vpop.permute.xlu0 %1173  ;;  %v909_v44 = vsel %vm908_vm10, %v1857_v25, %v1859_v27  ;;  %vm588_vm10 = vcmask 1022976  }
 0x1a7   : > { %v1261_v25 = vmul.f32 %v1917_v9, %v1934_v21 }
 0x1aa   : > { %886 = vrot.lane.b32.xlu0 %v879_v31, %s1597_s29  ;;  %665 = vrot.lane.b32.xlu1 %v658_v36, %s1606_s19  ;;  %v786_v31 = vmul.f32 %v781_v0, %v774_v26  ;;  %v810_v36 = vmul.f32 %v1839_v11, %v1963_v14  ;;  %s1616_s29 = smov 63   ;;  %v938_v26 = vmul.f32 %v1851_v22, %v1963_v14  ;;  %v1230_v0 = vpop.permute.xlu0 %1229 }
 0x1ac   : > { %v822_v33 = vmul.f32 %v1841_v12, %v810_v36 }
 0x1ae   : > { %919 = vrot.lane.b32.xlu0 %v913_v38, %s1613_s26  ;;  %700 = vrot.lane.b32.xlu1 %v693_v49, %s1607_s20  ;;  %v1180_v38 = vmul.f32 %v1913_v7, %v1168_v43  ;;  %v856_v49 = vmul.f32 %v851_v16, %v844_v8  ;;  %v1265_v36 = vpop.permute.xlu0 %1264  ;;  %v488_v43 = vmul.f32 %v1789_v46, %v1963_v14 }
 0x1af   : > { %v1008_v8 = vmul.f32 %v1907_v4, %v1963_v14  ;;  %v578_v46 = vmul.f32 %v1803_v51, %v556_v6  ;;  %v645_v51 = vmul.f32 %v1813_v55, %v1963_v14  ;;  %v1176_v55 = vsel %vm1175_vm13, %v1913_v7, %v2096_v60 }
 0x1b0   : > { %v510_v16 = vmul.f32 %v1792_v48, %v488_v43  ;;  %v601_v48 = vmul.f32 %v1806_v52, %v1963_v14  ;;  %vm669_vm13 = vcmask 916480  }
 0x1b1   : > { %v659_v52 = vmul.f32 %v1818_v56, %v645_v51  ;;  %v740_v56 = vmul.f32 %v1831_v61, %v1963_v14  ;;  %v2399_v61 = vld [vmem:[#allocation11_spill] sm:$0xff]  ;;  %v937_v51 = vmul.f32 %v1851_v22, %v1948_v2 }
 0x1b2   : > { %989 = vrot.lane.b32.xlu0 %v983_v40, %s1614_s27  ;;  %758 = vrot.lane.b32.xlu1 %v751_v35, %s1609_s22  ;;  %v914_v40 = vmul.f32 %v909_v44, %v902_v47  ;;  %v1226_v35 = vmul.f32 %v1909_v5, %v1934_v21  ;;  %v2395_v47 = vld [vmem:[#allocation7_spill] sm:$0xff] }
 0x1b3   : > { %v752_v43 = vmul.f32 %v1833_v62, %v740_v56  ;;  %v1065_v56 = vmul.f32 %v1871_v34, %v1948_v2 }
 0x1b6   : > { %1051 = vrot.lane.b32.xlu0 %v1043_v29, %s1600_s12  ;;  %793 = vrot.lane.b32.xlu1 %v786_v31, %s1610_s23  ;;  %v1238_v29 = vmul.f32 %v1230_v0, %v1226_v35  ;;  %v950_v31 = vmul.f32 %v1863_v30, %v938_v26  ;;  %v622_v35 = vmul.f32 %v1810_v53, %v601_v48 }
 0x1b7   : > { %v1169_v53 = vmul.f32 %v1927_v17, %v1948_v2 }
 0x1ba   : > { %1117 = vrot.lane.b32.xlu0 %v1111_v24, %s1615_s28  ;;  %830 = vrot.lane.b32.xlu1 %v822_v33, %s1611_s24  ;;  %v1273_v24 = vmul.f32 %v1265_v36, %v1261_v25  ;;  %v984_v33 = vmul.f32 %v979_v41, %v972_v20  ;;  %v1181_v41 = vmul.f32 %v1176_v55, %v1169_v53 }
 0x1be   : > { %1186 = vrot.lane.b32.xlu0 %v1180_v38, %s1616_s29  ;;  %863 = vrot.lane.b32.xlu1 %v856_v49, %s1612_s25  ;;  %v1020_v38 = vmul.f32 %v1919_v10, %v1008_v8  ;;  %v1066_v49 = vmul.f32 %v1871_v34, %v1963_v14  ;;  %v1262_v8 = vmul.f32 %v1917_v9, %v1948_v2 }
 0x1c0   : > { %v1078_v44 = vmul.f32 %v2395_v47, %v1066_v49  ;;  %v809_v49 = vmul.f32 %v1839_v11, %v1948_v2 }
 0x1c2   : > { %1211 = vrot.lane.b32.xlu0 %v1204_v19, %s1599_s11  ;;  %921 = vrot.lane.b32.xlu1 %v914_v40, %s1613_s26  ;;  %s1618_s11 = smov 60   ;;  %v1100_v19 = vmul.f32 %v1881_v39, %v1948_v2  ;;  %v1107_v40 = vsel %vm1106_vm12, %v1897_v54, %v2396_v50  ;;  %v682_v54 = vmul.f32 %v1825_v58, %v1963_v14  ;;  %vm890_vm12 = vcmask 769024  }
 0x1c3   : > { %v1227_v58 = vmul.f32 %v1909_v5, %v1948_v2 }
 0x1c4   : > { %v1112_v26 = vmul.f32 %v1107_v40, %v1100_v19  ;;  %v694_v20 = vmul.f32 %v1827_v59, %v682_v54  ;;  %v775_v59 = vmul.f32 %v1835_v63, %v1963_v14  ;;  %v816_v63 = vsel %vm815_vm1, %v1893_v45, %v1841_v12 }
 0x1c5   : > { %v821_v48 = vmul.f32 %v816_v63, %v809_v49  ;;  %v903_v12 = vmul.f32 %v1845_v18, %v1963_v14  ;;  %v944_v18 = vsel %vm943_vm4, %v1861_v28, %v1863_v30  ;;  %v973_v54 = vmul.f32 %v1903_v1, %v1963_v14 }
 0x1c6   : > { %1244 = vrot.lane.b32.xlu0 %v1238_v29, %s1617_s7  ;;  %958 = vrot.lane.b32.xlu1 %v950_v31, %s1603_s15  ;;  %v1136_v29 = vmul.f32 %v1923_v15, %v1963_v14  ;;  %v2397_v31 = vld [vmem:[#allocation9_spill] sm:$0xff]  ;;  %v1007_v28 = vmul.f32 %v1907_v4, %v1948_v2  ;;  %v1014_v30 = vsel %vm1013_vm5, %v1877_v37, %v1919_v10  ;;  %vm797_vm1 = vcmask 883712  }
 0x1c7   : > { %v985_v55 = vmul.f32 %v1867_v32, %v973_v54  ;;  %v1072_v32 = vsel %vm1071_vm6, %v1887_v42, %v2395_v47  ;;  %v1101_v37 = vmul.f32 %v1881_v39, %v1963_v14  ;;  %v1135_v42 = vmul.f32 %v1923_v15, %v1948_v2 }
 0x1c8   : > { %v1148_v25 = vmul.f32 %v2397_v31, %v1136_v29  ;;  %v1142_v39 = vsel %vm1141_vm8, %v1931_v23, %v2397_v31  ;;  %v1228_v23 = vmul.f32 %v1909_v5, %v1963_v14  ;;  %vm867_vm4 = vcmask 777216  }
 0x1c9   : > { %vm925_vm5 = vcmask 760832   ;;  %vm960_vm6 = vcmask 752640  }
 0x1ca   : > { %1279 = vrot.lane.b32.xlu0 %v1273_v24, %s1618_s11  ;;  %991 = vrot.lane.b32.xlu1 %v984_v33, %s1614_s27  ;;  %v2398_v24 = vld [vmem:[#allocation10_spill] sm:$0xff] }
 0x1cb   : > { %v1234_v33 = vsel %vm1233_vm14, %v1230_v0, %v2398_v24  ;;  %v787_v0 = vmul.f32 %v1837_v3, %v775_v59  ;;  %v845_v3 = vmul.f32 %v1843_v13, %v1963_v14  ;;  %vm704_vm14 = vcmask 908288  }
 0x1cc   : > { %v1239_v7 = vmul.f32 %v1234_v33, %v1227_v58  ;;  %v1077_v33 = vmul.f32 %v1072_v32, %v1065_v56 }
 0x1cd   : > { %v857_v40 = vmul.f32 %v1899_v57, %v845_v3 }
 0x1ce   : > { %518 = vrot.lane.b32.xlu0 %v510_v16, %s1601_s13  ;;  %1028 = vrot.lane.b32.xlu1 %v1020_v38, %s1605_s18  ;;  %v1269_v16 = vsel %vm1268_vm15, %v1265_v36, %v2399_v61  ;;  %v1300_v36 = vld [vmem:[%s2367_s6] sm:$0xf]  ;;  %vm762_vm15 = vcmask 891904  }
 0x1cf   : > { %v1274_v62 = vmul.f32 %v1269_v16, %v1262_v8  ;;  %v1147_v8 = vmul.f32 %v1142_v39, %v1135_v42  ;;  %v1170_v16 = vmul.f32 %v1927_v17, %v1963_v14  ;;  %v2401_v17 = vld [vmem:[#allocation2_spill] sm:$0xff] }
 0x1d2   : > { %586 = vrot.lane.b32.xlu0 %v578_v46, %s1602_s14  ;;  %1086 = vrot.lane.b32.xlu1 %v1078_v44, %s1608_s21 }
 0x1d6   : > { %630 = vrot.lane.b32.xlu0 %v622_v35, %s1604_s16  ;;  %1119 = vrot.lane.b32.xlu1 %v1112_v26, %s1615_s28  ;;  %v915_v26 = vmul.f32 %v1859_v27, %v903_v12 }
 0x1da   : > { %667 = vrot.lane.b32.xlu0 %v659_v52, %s1606_s19  ;;  %1156 = vrot.lane.b32.xlu1 %v1148_v25, %s1581_s17  ;;  %v949_v25 = vmul.f32 %v944_v18, %v937_v51 }
 0x1de   : > { %702 = vrot.lane.b32.xlu0 %v694_v20, %s1607_s20  ;;  %1188 = vrot.lane.b32.xlu1 %v1181_v41, %s1616_s29  ;;  %v1019_v41 = vmul.f32 %v1014_v30, %v1007_v28 }
 0x1e2   : > { %760 = vrot.lane.b32.xlu0 %v752_v43, %s1609_s22  ;;  %1246 = vrot.lane.b32.xlu1 %v1239_v7, %s1617_s7  ;;  %v1113_v7 = vmul.f32 %v2396_v50, %v1101_v37 }
 0x1e4   : > { %v538_v38 = vpop.permute.xlu0 %537  ;;  %v2176_v6 = vpop.permute.xlu1 %884 }
 0x1e6   : > { %795 = vrot.lane.b32.xlu0 %v787_v0, %s1610_s23  ;;  %1281 = vrot.lane.b32.xlu1 %v1274_v62, %s1618_s11  ;;  %v1182_v0 = vmul.f32 %v2096_v60, %v1170_v16  ;;  %v2400_v62 = vld [vmem:[#allocation6_spill] sm:$0xff] }
 0x1e7   : > { %v468_v49 = vmul.f32 %v2400_v62, %v1934_v21 }
 0x1e8   : > { %v722_v46 = vpop.permute.xlu0 %721  ;;  %v2188_v44 = vpop.permute.xlu1 %1209 }
 0x1e9   : > { %v478_v63 = vmul.f32 %v2401_v17, %v468_v49 }
 0x1ea   : > { %828 = vrot.lane.b32.xlu0 %v821_v48, %s1611_s24  ;;  %1303 = vperm.xlu1 %1523, %v1300_v36   ;;  %v1263_v48 = vmul.f32 %v1917_v9, %v1963_v14 }
 0x1ec   : > { %v1048_v11 = vpop.permute.xlu0 %1047  ;;  %v540_v19 = vpop.permute.xlu1 %539 }
 0x1ed   : > { %v2197_v45 = vsel %vm543_vm2, %v538_v38, %v540_v19 }
 0x1ee   : > { %865 = vrot.lane.b32.xlu0 %v857_v40, %s1612_s25 }
 0x1f0   : > { %v515_v35 = vpop.permute.xlu0 %514  ;;  %v724_v13 = vpop.permute.xlu1 %723 }
 0x1f1   : > { %v2204_v29 = vsel %vm727_vm3, %v722_v46, %v724_v13  ;;  %v1240_v46 = vmul.f32 %v2398_v24, %v1228_v23 }
 0x1f2   : > { %923 = vrot.lane.b32.xlu0 %v915_v26, %s1613_s26 }
 0x1f4   : > { %v542_v57 = vpop.permute.xlu0 %541  ;;  %v2209_v52 = vpop.permute.xlu1 %888 }
 0x1f5   : > { %v2214_v27 = vsel %vm543_vm2, %v540_v19, %v542_v57  ;;  %v1275_v19 = vmul.f32 %v2399_v61, %v1263_v48  ;;  %vm1215_vm2 = vcmask 506880  }
 0x1f6   : > { %956 = vrot.lane.b32.xlu0 %v949_v25, %s1603_s15 }
 0x1f8   : > { %v583_v22 = vpop.permute.xlu0 %582  ;;  %v2217_v53 = vpop.permute.xlu1 %954 }
 0x1fa   : > { %993 = vrot.lane.b32.xlu0 %v985_v55, %s1614_s27 }
 0x1fc   : > { %v627_v1 = vpop.permute.xlu0 %626  ;;  %v2225_v20 = vpop.permute.xlu1 %1024 }
 0x1fe   : > { %1026 = vrot.lane.b32.xlu0 %v1019_v41, %s1605_s18 }
 0x200   : > { %v664_v4 = vpop.permute.xlu0 %663  ;;  %v2232_v58 = vpop.permute.xlu1 %1049 }
 0x201   : > { %v2238_v10 = vsel %vm1053_vm7, %v1048_v11, %v2232_v58 }
 0x202   : > { %1084 = vrot.lane.b32.xlu0 %v1077_v33, %s1608_s21 }
 0x204   : > { %v699_v34 = vpop.permute.xlu0 %698  ;;  %v2241_v43 = vpop.permute.xlu1 %1082 }
 0x206   : > { %1121 = vrot.lane.b32.xlu0 %v1113_v7, %s1615_s28 }
 0x208   : > { %v726_v47 = vpop.permute.xlu0 %725  ;;  %v2250_v59 = vpop.permute.xlu1 %1152 }
 0x209   : > { %v2255_v38 = vsel %vm727_vm3, %v724_v13, %v726_v47  ;;  %vm832_vm3 = vcmask 785408  }
 0x20a   : > { %1154 = vrot.lane.b32.xlu0 %v1147_v8, %s1581_s17  ;;  %v2402_v8 = vld [vmem:[#allocation3_spill] sm:$0xff]  ;;  %s1420_s17 = sshll.u32 %s2407_s10, 4 }
 0x20b   : > { %s332_s16 = scalar_lea.vmem %s2370_s9, %s1420_s17 }
 0x20c   : > { %v757_v50 = vpop.permute.xlu0 %756  ;;  %v1214_v15 = vpop.permute.xlu1 %1213 }
 0x20e   : > { %1190 = vrot.lane.b32.xlu0 %v1182_v0, %s1616_s29 }
 0x210   : > { %v792_v31 = vpop.permute.xlu0 %791  ;;  %v517_v36 = vpop.permute.xlu1 %516 }
 0x211   : > { %v521_v60 = vsel %vm520_vm9, %v515_v35, %v517_v36 }
 0x212   : > { %v525_v3 = vadd.f32 %v521_v60, %v478_v63  ;;  %1248 = vrot.lane.b32.xlu0 %v1240_v46, %s1617_s7 }
 0x214   : > { %v2270_v21 = vpop.permute.xlu0 %826  ;;  %v548_v5 = vadd.f32 %v2197_v45, %v525_v3  ;;  %v585_v11 = vpop.permute.xlu1 %584 }
 0x215   : > { %v589_v40 = vsel %vm588_vm10, %v583_v22, %v585_v11 }
 0x216   : > { %v593_v12 = vadd.f32 %v589_v40, %v548_v5  ;;  %1283 = vrot.lane.b32.xlu0 %v1275_v19, %s1618_s11 }
 0x218   : > { %v2276_v9 = vpop.permute.xlu0 %861  ;;  %v629_v14 = vpop.permute.xlu1 %628 }
 0x219   : > { %v633_v24 = vsel %vm632_vm11, %v627_v1, %v629_v14 }
 0x21a   : > { %v637_v35 = vadd.f32 %v633_v24, %v593_v12 }
 0x21c   : > { %v887_v13 = vpop.permute.xlu0 %886  ;;  %v666_v26 = vpop.permute.xlu1 %665 }
 0x21d   : > { %v2280_v45 = vsel %vm890_vm12, %v2176_v6, %v887_v13  ;;  %v2283_v61 = vsel %vm890_vm12, %v887_v13, %v2209_v52  ;;  %v670_v51 = vsel %vm669_vm13, %v664_v4, %v666_v26  ;;  %vm1192_vm12 = vcmask 515072  }
 0x21e   : > { %v674_v18 = vadd.f32 %v670_v51, %v637_v35 }
 0x220   : > { %v2286_v57 = vpop.permute.xlu0 %919  ;;  %v701_v25 = vpop.permute.xlu1 %700 }
 0x221   : > { %v705_v54 = vsel %vm704_vm14, %v699_v34, %v701_v25 }
 0x222   : > { %v709_v22 = vadd.f32 %v705_v54, %v674_v18 }
 0x224   : > { %v2289_v55 = vpop.permute.xlu0 %989  ;;  %v732_v28 = vadd.f32 %v2204_v29, %v709_v22  ;;  %v759_v6 = vpop.permute.xlu1 %758 }
 0x225   : > { %v763_v30 = vsel %vm762_vm15, %v757_v50, %v759_v6 }
 0x226   : > { %v767_v52 = vadd.f32 %v763_v30, %v732_v28 }
 0x228   : > { %v1052_v1 = vpop.permute.xlu0 %1051  ;;  %v794_v41 = vpop.permute.xlu1 %793 }
 0x229   : > { %v2295_v56 = vsel %vm1053_vm7, %v2232_v58, %v1052_v1  ;;  %v798_v32 = vsel %vm797_vm1, %v792_v31, %v794_v41  ;;  %v469_v58 = vmul.f32 %v2400_v62, %v1948_v2  ;;  %vm995_vm7 = vcmask 654336  }
 0x22a   : > { %v802_v4 = vadd.f32 %v798_v32, %v767_v52 }
 0x22b   : > { %v479_v16 = vmul.f32 %v2402_v8, %v469_v58 }
 0x22c   : > { %v2298_v33 = vpop.permute.xlu0 %1117  ;;  %v831_v39 = vpop.permute.xlu1 %830 }
 0x230   : > { %v2300_v37 = vpop.permute.xlu0 %1186  ;;  %v864_v31 = vpop.permute.xlu1 %863 }
 0x231   : > { %v868_v28 = vsel %vm867_vm4, %v2276_v9, %v864_v31 }
 0x234   : > { %v2302_v29 = vpop.permute.xlu0 %1211  ;;  %v922_v46 = vpop.permute.xlu1 %921 }
 0x235   : > { %v2306_v34 = vsel %vm1215_vm2, %v2302_v29, %v1214_v15 }
 0x238   : > { %v2308_v7 = vpop.permute.xlu0 %1244  ;;  %v959_v19 = vpop.permute.xlu1 %958 }
 0x23c   : > { %v2310_v42 = vpop.permute.xlu0 %1279  ;;  %v992_v24 = vpop.permute.xlu1 %991 }
 0x240   : > { %v519_v47 = vpop.permute.xlu0 %518  ;;  %v1029_v54 = vpop.permute.xlu1 %1028 }
 0x241   : > { %v522_v50 = vsel %vm520_vm9, %v517_v36, %v519_v47  ;;  %vm1030_vm9 = vcmask 646144  }
 0x242   : > { %v526_v0 = vadd.f32 %v522_v50, %v479_v16 }
 0x244   : > { %v587_v49 = vpop.permute.xlu0 %586  ;;  %v549_v23 = vadd.f32 %v2214_v27, %v526_v0  ;;  %v1087_v58 = vpop.permute.xlu1 %1086  ;;  %v996_v0 = vsel %vm995_vm7, %v2289_v55, %v992_v24 }
 0x245   : > { %v590_v17 = vsel %vm588_vm10, %v585_v11, %v587_v49  ;;  %vm1088_vm10 = vcmask 629760  }
 0x246   : > { %v594_v48 = vadd.f32 %v590_v17, %v549_v23 }
 0x248   : > { %v631_v15 = vpop.permute.xlu0 %630  ;;  %v1120_v16 = vpop.permute.xlu1 %1119 }
 0x249   : > { %v634_v63 = vsel %vm632_vm11, %v629_v14, %v631_v15  ;;  %vm1123_vm11 = vcmask 621568  }
 0x24a   : > { %v638_v62 = vadd.f32 %v634_v63, %v594_v48 }
 0x24c   : > { %v668_v60 = vpop.permute.xlu0 %667  ;;  %v1157_v17 = vpop.permute.xlu1 %1156 }
 0x24d   : > { %v671_v2 = vsel %vm669_vm13, %v666_v26, %v668_v60  ;;  %vm1250_vm13 = vcmask 498688  }
 0x24e   : > { %v675_v3 = vadd.f32 %v671_v2, %v638_v62 }
 0x250   : > { %v703_v5 = vpop.permute.xlu0 %702 }
 0x251   : > { %v706_v36 = vsel %vm704_vm14, %v701_v25, %v703_v5  ;;  %v1189_v5 = vpop.permute.xlu1 %1188  ;;  %vm1285_vm14 = vcmask 490496  }
 0x252   : > { %v710_v40 = vadd.f32 %v706_v36, %v675_v3 }
 0x254   : > { %v761_v12 = vpop.permute.xlu0 %760  ;;  %v733_v27 = vadd.f32 %v2255_v38, %v710_v40 }
 0x255   : > { %v764_v11 = vsel %vm762_vm15, %v759_v6, %v761_v12  ;;  %vm1341_vm15 = vcmask 1045504  }
 0x256   : > { %v768_v13 = vadd.f32 %v764_v11, %v733_v27 }
 0x258   : > { %v796_v35 = vpop.permute.xlu0 %795 }
 0x259   : > { %v799_v14 = vsel %vm797_vm1, %v794_v41, %v796_v35  ;;  %v926_v41 = vsel %vm925_vm5, %v2286_v57, %v922_v46 }
 0x25a   : > { %v803_v25 = vadd.f32 %v799_v14, %v768_v13 }
 0x25c   : > { %v829_v26 = vpop.permute.xlu0 %828 }
 0x25d   : > { %v833_v51 = vsel %vm832_vm3, %v2270_v21, %v829_v26  ;;  %v834_v18 = vsel %vm832_vm3, %v829_v26, %v831_v39 }
 0x25e   : > { %v837_v22 = vadd.f32 %v833_v51, %v802_v4  ;;  %v838_v38 = vadd.f32 %v834_v18, %v803_v25  ;;  %v1216_v18 = vsel %vm1215_vm2, %v2188_v44, %v2302_v29 }
 0x260   : > { %v872_v30 = vadd.f32 %v868_v28, %v837_v22  ;;  %v866_v52 = vpop.permute.xlu0 %865 }
 0x261   : > { %v869_v1 = vsel %vm867_vm4, %v864_v31, %v866_v52 }
 0x262   : > { %v873_v6 = vadd.f32 %v869_v1, %v838_v38  ;;  %v895_v32 = vadd.f32 %v2280_v45, %v872_v30 }
 0x264   : > { %v924_v47 = vpop.permute.xlu0 %923  ;;  %v896_v21 = vadd.f32 %v2283_v61, %v873_v6  ;;  %v930_v39 = vadd.f32 %v926_v41, %v895_v32  ;;  %v2403_v32 = vld [vmem:[#allocation12_spill] sm:$0xff] }
 0x265   : > { %v927_v8 = vsel %vm925_vm5, %v922_v46, %v924_v47 }
 0x266   : > { %v931_v23 = vadd.f32 %v927_v8, %v896_v21 }
 0x268   : > { %v957_v4 = vpop.permute.xlu0 %956 }
 0x269   : > { %v961_v9 = vsel %vm960_vm6, %v2217_v53, %v957_v4  ;;  %v962_v49 = vsel %vm960_vm6, %v957_v4, %v959_v19  ;;  %v1124_v19 = vsel %vm1123_vm11, %v2298_v33, %v1120_v16 }
 0x26a   : > { %v965_v50 = vadd.f32 %v961_v9, %v930_v39  ;;  %v966_v15 = vadd.f32 %v962_v49, %v931_v23 }
 0x26c   : > { %v994_v45 = vpop.permute.xlu0 %993  ;;  %v1000_v31 = vadd.f32 %v996_v0, %v965_v50 }
 0x26d   : > { %v997_v57 = vsel %vm995_vm7, %v992_v24, %v994_v45  ;;  %v1247_v24 = vpop.permute.xlu1 %1246 }
 0x26e   : > { %v1001_v61 = vadd.f32 %v997_v57, %v966_v15 }
 0x270   : > { %v1027_v63 = vpop.permute.xlu0 %1026 }
 0x271   : > { %v1031_v48 = vsel %vm1030_vm9, %v2225_v20, %v1027_v63  ;;  %v1032_v60 = vsel %vm1030_vm9, %v1027_v63, %v1029_v54  ;;  %v1282_v25 = vpop.permute.xlu1 %1281 }
 0x272   : > { %v1035_v46 = vadd.f32 %v1031_v48, %v1000_v31  ;;  %v1036_v2 = vadd.f32 %v1032_v60, %v1001_v61  ;;  %v2404_v31 = vld [vmem:[#allocation4_spill] sm:$0xff] }
 0x273   : > { %v1328_v57 = vrot.slane %v2404_v31, 6 }
 0x274   : > { %v1085_v53 = vpop.permute.xlu0 %1084  ;;  %v1058_v55 = vadd.f32 %v2238_v10, %v1035_v46  ;;  %v1059_v62 = vadd.f32 %v2295_v56, %v1036_v2  ;;  %v2405_v46 = vld [vmem:[#allocation5_spill] sm:$0xff] }
 0x275   : > { %v1089_v3 = vsel %vm1088_vm10, %v2241_v43, %v1085_v53  ;;  %v1090_v27 = vsel %vm1088_vm10, %v1085_v53, %v1087_v58  ;;  %v1193_v43 = vsel %vm1192_vm12, %v2300_v37, %v1189_v5  ;;  %v1286_v37 = vsel %vm1285_vm14, %v2310_v42, %v1282_v25  ;;  %v1304_v44 = vpop.permute.xlu1 %1303 }
 0x276   : > { %v1093_v36 = vadd.f32 %v1089_v3, %v1058_v55  ;;  %v1094_v35 = vadd.f32 %v1090_v27, %v1059_v62  ;;  %v1329_v2 = vrot.slane %v2405_v46, 6 }
 0x278   : > { %v1122_v40 = vpop.permute.xlu0 %1121  ;;  %v1128_v12 = vadd.f32 %v1124_v19, %v1093_v36 }
 0x279   : > { %v1125_v20 = vsel %vm1123_vm11, %v1120_v16, %v1122_v40 }
 0x27a   : > { %v1129_v56 = vadd.f32 %v1125_v20, %v1094_v35 }
 0x27c   : > { %v1155_v11 = vpop.permute.xlu0 %1154 }
 0x27d   : > { %v1158_v14 = vsel %vm1141_vm8, %v2250_v59, %v1155_v11  ;;  %v1159_v10 = vsel %vm1141_vm8, %v1155_v11, %v1157_v17  ;;  %v1251_v59 = vsel %vm1250_vm13, %v2308_v7, %v1247_v24  ;;  %vm1336_vm8 = vcmask 1041408  }
 0x27e   : > { %v1162_v13 = vadd.f32 %v1158_v14, %v1128_v12  ;;  %v1163_v26 = vadd.f32 %v1159_v10, %v1129_v56 }
 0x280   : > { %v1197_v33 = vadd.f32 %v1193_v43, %v1162_v13  ;;  %v1191_v51 = vpop.permute.xlu0 %1190 }
 0x281   : > { %v1194_v54 = vsel %vm1192_vm12, %v1189_v5, %v1191_v51 }
 0x282   : > { %v1220_v22 = vadd.f32 %v1216_v18, %v1197_v33  ;;  %v1198_v28 = vadd.f32 %v1194_v54, %v1163_v26 }
 0x284   : > { %v1255_v38 = vadd.f32 %v1251_v59, %v1220_v22  ;;  %v1249_v30 = vpop.permute.xlu0 %1248  ;;  %v1221_v52 = vadd.f32 %v2306_v34, %v1198_v28 }
 0x285   : > { %v1252_v1 = vsel %vm1250_vm13, %v1247_v24, %v1249_v30 }
 0x286   : > { %v1290_v6 = vadd.f32 %v1286_v37, %v1255_v38  ;;  %v1256_v58 = vadd.f32 %v1252_v1, %v1221_v52 }
 0x288   : > { %v1298_v41 = vmul.f32 %v2403_v32, %v1290_v6  ;;  %v1284_v47 = vpop.permute.xlu0 %1283 }
 0x289   : > { %v1287_v29 = vsel %vm1285_vm14, %v1282_v25, %v1284_v47 }
 0x28a   : > { %v1306_v21 = vadd.f32 %v1304_v44, %v1298_v41  ;;  %v1291_v39 = vadd.f32 %v1287_v29, %v1256_v58 }
 0x28c   : > { %v1415_v4 = vmul.f32 -1.442695, %v1306_v21  ;;  %v1299_v7 = vmul.f32 %v2403_v32, %v1291_v39 }
 0x28e   : > { %1534 = vpow2.f32 %v1415_v4  ;;  %v1307_v8 = vadd.f32 %v1304_v44, %v1299_v7 }
 0x290   : > { %v1416_v9 = vmul.f32 -1.442695, %v1307_v8 }
 0x292   : > { %1536 = vpow2.f32 %v1416_v9 }
 0x29b   : > { %v1535_v34 = vpop.eup %1534 }
 0x29c   : > { %v1314_v42 = vadd.f32 1.0, %v1535_v34 }
 0x29e   : > { %1538 = vrcp.f32 %v1314_v42 }
 0x29f   : > { %v1537_v16 = vpop.eup %1536 }
 0x2a0   : > { %v1315_v50 = vadd.f32 1.0, %v1537_v16 }
 0x2a2   : > { %1540 = vrcp.f32 %v1315_v50 }
 0x2ab   : > { %v1539_v0 = vpop.eup %1538 }
 0x2ac   : > { %v1320_v49 = vmul.f32 %v1539_v0, %v1306_v21 }
 0x2ae   : > { %v1324_v23 = vrot.slane %v1320_v49, 6  ;;  %v1332_v15 = vrot.slane %v1320_v49, 4 }
 0x2af   : > { %v1541_v45 = vpop.eup %1540 }
 0x2b0   : > { %v1321_v17 = vmul.f32 %v1541_v45, %v1307_v8  ;;  %v1337_v61 = vsel %vm1336_vm8, %v2404_v31, %v1324_v23 }
 0x2b1   : > { %v1339_v63 = vsel %vm341_vm0, %v1337_v61, %v1328_v57 }
 0x2b2   : > { %v1325_v48 = vrot.slane %v1321_v17, 6  ;;  %v1342_v60 = vsel %vm1341_vm15, %v1339_v63, %v1332_v15  ;;  %v1333_v53 = vrot.slane %v1321_v17, 4 }
 0x2b3   : > { %1344 = vst [vmem:[%s332_s16] sm:$0xff] %v1342_v60 }
 0x2b4   : > { %v1338_v55 = vsel %vm1336_vm8, %v2405_v46, %v1325_v48 }
 0x2b5   : > { %v1340_v62 = vsel %vm341_vm0, %v1338_v55, %v1329_v2 }
 0x2b6   : > { %v1343_v3 = vsel %vm1341_vm15, %v1340_v62, %v1333_v53 }
 0x2b7   : > { %1345 = vst [vmem:[%s332_s16 + $0x8] sm:$0xff] %v1343_v3 }
 0x2b8 PF: > { %s19_s30 = sadd.s32 1, %s1548_s30  }
 0x2b9   : > { %p16_p4 = scmp.ge.s32.totalorder %s19_s30, 4  }
 0x2bb   :  { %18 = sbr.rel (!%p16_p4) target bundleno = 1 (0x1), region = 86 }

</bundles_post_ra>
